<compile_context>
chip_gen: v6e
topology: v6e:2x2x1
jax: 0.10.0
libtpu: 0.0.40
codegen_flags: <defaults>
</compile_context>

<pallas_src>
import jax
import jax.numpy as jnp
from jax import lax
from jax.experimental import pallas as pl
from jax.experimental.pallas import tpu as pltpu


def _largest_divisor_at_most(n: int, cap: int) -> int:
    cap = max(1, min(cap, n))
    for d in range(cap, 0, -1):
        if n % d == 0:
            return d
    return 1


def _nhwc_parity_quadrants(x_nchw, *, pad_top_left: bool, dtype):
    """NCHW -> NHWC (+optional 1-pixel top/left zero pad, +cast), split into the
    four (row parity, col parity) quadrants.  XLA fuses this into one pass."""
    x = jnp.transpose(x_nchw, (0, 2, 3, 1)).astype(dtype)
    if pad_top_left:
        x = jnp.pad(x, ((0, 0), (1, 0), (1, 0), (0, 0)))
    return (x[:, 0::2, 0::2, :], x[:, 0::2, 1::2, :],
            x[:, 1::2, 0::2, :], x[:, 1::2, 1::2, :])


# ---------------------------------------------------------------------------
# use_conv=True : Conv2d(C, C, kernel_size=3, stride=2, padding=1)
# ---------------------------------------------------------------------------
def _conv_kernel(q00_ref, q01_ref, q10_ref, q11_ref, w_ref, b_ref, o_ref):
    """One (cout-tile, batch-tile) step of the stride-2 3x3 conv.

    q00_ref: (TB, Ho+1, Wo+1, C)  even padded rows,  even padded cols  (bf16)
    q01_ref: (TB, Ho+1, Wo,   C)  even padded rows,  odd  padded cols
    q10_ref: (TB, Ho,   Wo+1, C)  odd  padded rows,  even padded cols
    q11_ref: (TB, Ho,   Wo,   C)  odd  padded rows,  odd  padded cols
    w_ref  : (9*C, TCout)         HWIO weights flattened (ki, kj, cin) -> bf16
    b_ref  : (1, TCout)           bias (f32)
    o_ref  : (TB, Ho, Wo, TCout)  output tile
    """
    TB, Ho, Wo, tcout = o_ref.shape
    C = q00_ref.shape[-1]
    M = TB * Ho * Wo

    x00 = q00_ref[...]
    x01 = q01_ref[...]
    x10 = q10_ref[...]
    x11 = q11_ref[...]
    w = w_ref[...]
    quad = {(0, 0): x00, (0, 1): x01, (1, 0): x10, (1, 1): x11}

    acc = jnp.zeros((M, tcout), jnp.float32)
    # Output pixel (r, c) of tap (ki, kj) reads padded pixel (2r+ki, 2c+kj):
    #   ki/kj == 1 -> odd-parity quadrant at offset 0
    #   ki/kj == 0 -> even-parity quadrant at offset 0
    #   ki/kj == 2 -> even-parity quadrant at offset 1
    for ki in range(3):
        rp, ro = (1, 0) if ki == 1 else (0, ki // 2)
        for kj in range(3):
            cp, co = (1, 0) if kj == 1 else (0, kj // 2)
            tap = quad[(rp, cp)][:, ro:ro + Ho, co:co + Wo, :]     # (TB,Ho,Wo,C)
            t = ki * 3 + kj
            acc = acc + jnp.dot(tap.reshape(M, C),
                                w[t * C:(t + 1) * C, :],
                                preferred_element_type=jnp.float32)

    acc = acc + b_ref[...]                                         # broadcasts
    o_ref[...] = acc.reshape(TB, Ho, Wo, tcout).astype(o_ref.dtype)


@jax.jit
def downsample_conv2d(x_nchw, weight_oihw, bias):
    """Downsample.forward with use_conv=True, dims=2.  x: NCHW -> NCHW."""
    N, C, H, W = x_nchw.shape
    Cout, Cin, kh, kw = weight_oihw.shape
    assert (Cin, kh, kw) == (C, 3, 3)
    assert H % 2 == 0 and W % 2 == 0, "even spatial dims assumed"
    Ho, Wo = H // 2, W // 2

    # Activation stream pre-cast to bf16 (MXU runs bf16 anyway); weights bf16,
    # bias stays f32 and is added after the f32 accumulation.
    q00, q01, q10, q11 = _nhwc_parity_quadrants(
        x_nchw, pad_top_left=True, dtype=jnp.bfloat16)
    w_flat = (jnp.transpose(weight_oihw, (2, 3, 1, 0))             # HWIO
              .reshape(9 * C, Cout).astype(jnp.bfloat16))
    bias2d = bias.reshape(1, Cout).astype(jnp.float32)

    # Cout tiling bounds resident-weight VMEM at large channel counts (v7x).
    tcout = 256 if (Cout >= 512 and Cout % 256 == 0) else Cout
    nJ = Cout // tcout

    # Batch tiling so (inputs + output + accumulator) per step fit a VMEM budget.
    in_bytes_per_img = ((Ho + 1) * (Wo + 1) + (Ho + 1) * Wo
                        + Ho * (Wo + 1) + Ho * Wo) * C * 2          # bf16
    out_bytes_per_img = Ho * Wo * tcout * 4                         # f32 out
    acc_bytes_per_img = Ho * Wo * tcout * 4                         # f32 acc
    per_img = in_bytes_per_img + out_bytes_per_img + acc_bytes_per_img
    budget = 12 * 1024 * 1024
    TB = _largest_divisor_at_most(N, max(1, budget // max(per_img, 1)))
    nB = N // TB

    w_bytes = 9 * C * tcout * 2 + 4 * tcout
    vmem_est = 2 * TB * per_img + 2 * w_bytes + (4 << 20)
    vmem_limit = int(min(max(vmem_est, 32 << 20), 64 << 20))

    cost = pl.CostEstimate(
        flops=2 * N * Ho * Wo * 9 * C * Cout,
        transcendentals=0,
        bytes_accessed=int(sum(int(a.size) * a.dtype.itemsize
                               for a in (q00, q01, q10, q11, w_flat, bias2d))
                           + N * Ho * Wo * Cout * x_nchw.dtype.itemsize))

    out = pl.pallas_call(
        _conv_kernel,
        out_shape=jax.ShapeDtypeStruct((N, Ho, Wo, Cout), x_nchw.dtype),
        grid=(nJ, nB),
        in_specs=[
            pl.BlockSpec((TB, Ho + 1, Wo + 1, C), lambda j, b: (b, 0, 0, 0)),
            pl.BlockSpec((TB, Ho + 1, Wo, C),     lambda j, b: (b, 0, 0, 0)),
            pl.BlockSpec((TB, Ho, Wo + 1, C),     lambda j, b: (b, 0, 0, 0)),
            pl.BlockSpec((TB, Ho, Wo, C),         lambda j, b: (b, 0, 0, 0)),
            # constant-in-b index maps: weights/bias stay resident across batch
            pl.BlockSpec((9 * C, tcout),          lambda j, b: (0, j)),
            pl.BlockSpec((1, tcout),              lambda j, b: (0, j)),
        ],
        out_specs=pl.BlockSpec((TB, Ho, Wo, tcout), lambda j, b: (b, 0, 0, j)),
        compiler_params=pltpu.CompilerParams(
            dimension_semantics=("parallel", "parallel"),
            vmem_limit_bytes=vmem_limit),
        cost_estimate=cost,
    )(q00, q01, q10, q11, w_flat, bias2d)
    return jnp.transpose(out, (0, 3, 1, 2))                         # back to NCHW


# ---------------------------------------------------------------------------
# use_conv=False : AvgPool2d(kernel_size=2, stride=2)
# ---------------------------------------------------------------------------
def _avgpool_kernel(q00_ref, q01_ref, q10_ref, q11_ref, o_ref):
    """2x2 stride-2 average pool; each quadrant ref is one corner of the window."""
    s = (q00_ref[...].astype(jnp.float32) + q01_ref[...].astype(jnp.float32)
         + q10_ref[...].astype(jnp.float32) + q11_ref[...].astype(jnp.float32))
    o_ref[...] = (s * 0.25).astype(o_ref.dtype)


@jax.jit
def downsample_avgpool2d(x_nchw):
    """Downsample.forward with use_conv=False, dims=2.  x: NCHW -> NCHW."""
    N, C, H, W = x_nchw.shape
    assert H % 2 == 0 and W % 2 == 0, "even spatial dims assumed"
    Ho, Wo = H // 2, W // 2

    # Keep original dtype (f32) -> bit-exact vs. PyTorch AvgPool2d (mem-bound anyway).
    q00, q01, q10, q11 = _nhwc_parity_quadrants(
        x_nchw, pad_top_left=False, dtype=x_nchw.dtype)

    itemsize = x_nchw.dtype.itemsize
    bytes_per_row = 4 * Wo * C * itemsize + Wo * C * itemsize + Wo * C * 4
    budget = 16 * 1024 * 1024
    TH = _largest_divisor_at_most(Ho, max(1, budget // max(bytes_per_row, 1)))
    TB = _largest_divisor_at_most(N, max(1, budget // max(TH * bytes_per_row, 1)))
    nT, nB = Ho // TH, N // TB
    vmem_limit = int(min(max(4 * TB * TH * bytes_per_row, 32 << 20), 64 << 20))

    cost = pl.CostEstimate(
        flops=4 * N * Ho * Wo * C,
        transcendentals=0,
        bytes_accessed=int(4 * N * Ho * Wo * C * itemsize
                           + N * Ho * Wo * C * itemsize))

    out = pl.pallas_call(
        _avgpool_kernel,
        out_shape=jax.ShapeDtypeStruct((N, Ho, Wo, C), x_nchw.dtype),
        grid=(nB, nT),
        in_specs=[pl.BlockSpec((TB, TH, Wo, C), lambda b, t: (b, t, 0, 0))
                  for _ in range(4)],
        out_specs=pl.BlockSpec((TB, TH, Wo, C), lambda b, t: (b, t, 0, 0)),
        compiler_params=pltpu.CompilerParams(
            dimension_semantics=("parallel", "parallel"),
            vmem_limit_bytes=vmem_limit),
        cost_estimate=cost,
    )(q00, q01, q10, q11)
    return jnp.transpose(out, (0, 3, 1, 2))


def downsample_forward(x_nchw, use_conv, weight_oihw=None, bias=None):
    """Mirror of Downsample.forward (dims=2)."""
    if use_conv:
        return downsample_conv2d(x_nchw, weight_oihw, bias)
    return downsample_avgpool2d(x_nchw)


if __name__ == "__main__":
    key = jax.random.PRNGKey(0)
    kx, kw, kb, kx2, kw2, kb2 = jax.random.split(key, 6)

    # ---- use_conv=True, small C ----
    N, C, H, W = 2, 4, 16, 16
    channels = C
    x = jax.random.normal(kx, (N, C, H, W), jnp.float32)
    assert x.shape[1] == channels                      # Downsample.forward assert
    w_oihw = jax.random.normal(kw, (C, C, 3, 3), jnp.float32) * 0.1
    bias = jax.random.normal(kb, (C,), jnp.float32) * 0.1

    y = jax.block_until_ready(downsample_forward(x, True, w_oihw, bias))
    xb = x.astype(jnp.bfloat16).astype(jnp.float32)    # kernel uses bf16 MXU operands
    wb = w_oihw.astype(jnp.bfloat16).astype(jnp.float32)
    ref = lax.conv_general_dilated(
        xb, wb, window_strides=(2, 2), padding=((1, 1), (1, 1)),
        dimension_numbers=("NCHW", "OIHW", "NCHW"),
        precision=lax.Precision.HIGHEST) + bias.reshape(1, C, 1, 1)
    assert y.shape == (N, C, H // 2, W // 2)
    assert jnp.allclose(y, ref, atol=5e-3, rtol=5e-3), "conv (C=4) mismatch"

    # ---- use_conv=True, lane-aligned C=128 ----
    C2 = 128
    x2 = jax.random.normal(kx2, (N, C2, H, W), jnp.float32)
    w2 = jax.random.normal(kw2, (C2, C2, 3, 3), jnp.float32) * 0.05
    b2 = jax.random.normal(kb2, (C2,), jnp.float32) * 0.1
    y2 = jax.block_until_ready(downsample_forward(x2, True, w2, b2))
    x2b = x2.astype(jnp.bfloat16).astype(jnp.float32)
    w2b = w2.astype(jnp.bfloat16).astype(jnp.float32)
    ref2 = lax.conv_general_dilated(
        x2b, w2b, window_strides=(2, 2), padding=((1, 1), (1, 1)),
        dimension_numbers=("NCHW", "OIHW", "NCHW"),
        precision=lax.Precision.HIGHEST) + b2.reshape(1, C2, 1, 1)
    assert y2.shape == (N, C2, H // 2, W // 2)
    assert jnp.allclose(y2, ref2, atol=5e-3, rtol=5e-3), "conv (C=128) mismatch"

    # ---- use_conv=False (AvgPool2d(2, 2)) ----
    y_pool = jax.block_until_ready(downsample_forward(x, False))
    ref_pool = x.reshape(N, C, H // 2, 2, W // 2, 2).mean(axis=(3, 5))
    assert y_pool.shape == (N, C, H // 2, W // 2)
    assert jnp.allclose(y_pool, ref_pool, atol=1e-5, rtol=1e-5), "pool mismatch"

    print("KERNEL_OK")
</pallas_src>

<mosaic_0001>
module attributes {stable_mosaic.version = 11 : i64} {
  func.func @_conv_kernel(%arg0: i32, %arg1: i32, %arg2: memref<2x9x9x4xbf16, #tpu.memory_space<vmem>>, %arg3: memref<2x9x8x4xbf16, #tpu.memory_space<vmem>>, %arg4: memref<2x8x9x4xbf16, #tpu.memory_space<vmem>>, %arg5: memref<2x8x8x4xbf16, #tpu.memory_space<vmem>>, %arg6: memref<36x4xbf16, #tpu.memory_space<vmem>>, %arg7: memref<1x4xf32, #tpu.memory_space<vmem>>, %arg8: memref<2x8x8x4xf32, #tpu.memory_space<vmem>>) attributes {dimension_semantics = [#tpu.dimension_semantics<parallel>, #tpu.dimension_semantics<parallel>], iteration_bounds = array<i64: 1, 1>, scalar_prefetch = 0 : i64, scratch_operands = 0 : i64, tpu.core_type = #tpu.core_type<tc>, window_params = [{transform_indices = @transform_0, window_bounds = array<i64: 2, 9, 9, 4>}, {transform_indices = @transform_1, window_bounds = array<i64: 2, 9, 8, 4>}, {transform_indices = @transform_2, window_bounds = array<i64: 2, 8, 9, 4>}, {transform_indices = @transform_3, window_bounds = array<i64: 2, 8, 8, 4>}, {transform_indices = @transform_4, window_bounds = array<i64: 36, 4>}, {transform_indices = @transform_5, window_bounds = array<i64: 1, 4>}, {transform_indices = @transform_6, window_bounds = array<i64: 2, 8, 8, 4>}]} {
    %c0 = arith.constant 0 : index
    %c0_0 = arith.constant 0 : index
    %c0_1 = arith.constant 0 : index
    %c0_2 = arith.constant 0 : index
    %0 = vector.load %arg2[%c0, %c0_0, %c0_1, %c0_2] : memref<2x9x9x4xbf16, #tpu.memory_space<vmem>>, vector<2x9x9x4xbf16>
    %c0_3 = arith.constant 0 : index
    %c0_4 = arith.constant 0 : index
    %c0_5 = arith.constant 0 : index
    %c0_6 = arith.constant 0 : index
    %1 = vector.load %arg3[%c0_3, %c0_4, %c0_5, %c0_6] : memref<2x9x8x4xbf16, #tpu.memory_space<vmem>>, vector<2x9x8x4xbf16>
    %c0_7 = arith.constant 0 : index
    %c0_8 = arith.constant 0 : index
    %c0_9 = arith.constant 0 : index
    %c0_10 = arith.constant 0 : index
    %2 = vector.load %arg4[%c0_7, %c0_8, %c0_9, %c0_10] : memref<2x8x9x4xbf16, #tpu.memory_space<vmem>>, vector<2x8x9x4xbf16>
    %c0_11 = arith.constant 0 : index
    %c0_12 = arith.constant 0 : index
    %c0_13 = arith.constant 0 : index
    %c0_14 = arith.constant 0 : index
    %3 = vector.load %arg5[%c0_11, %c0_12, %c0_13, %c0_14] : memref<2x8x8x4xbf16, #tpu.memory_space<vmem>>, vector<2x8x8x4xbf16>
    %c0_15 = arith.constant 0 : index
    %c0_16 = arith.constant 0 : index
    %4 = vector.load %arg6[%c0_15, %c0_16] : memref<36x4xbf16, #tpu.memory_space<vmem>>, vector<36x4xbf16>
    %cst = arith.constant 0.000000e+00 : f32
    %5 = vector.broadcast %cst : f32 to vector<128x4xf32>
    %6 = vector.extract_strided_slice %0 {offsets = [0, 0, 0, 0], sizes = [2, 8, 8, 4], strides = [1, 1, 1, 1]} : vector<2x9x9x4xbf16> to vector<2x8x8x4xbf16>
    %7 = vector.shape_cast %6 : vector<2x8x8x4xbf16> to vector<128x4xbf16>
    %8 = vector.extract_strided_slice %4 {offsets = [0, 0], sizes = [4, 4], strides = [1, 1]} : vector<36x4xbf16> to vector<4x4xbf16>
    %cst_17 = arith.constant dense<0.000000e+00> : vector<128x4xf32>
    %9 = tpu.matmul %7, %8, %cst_17 {dimension_numbers = #tpu.dot_dimension_numbers<[1], [0], [0], [1], [0, 0, 1, 1], [], []>} : vector<128x4xbf16>, vector<4x4xbf16>, vector<128x4xf32> -> vector<128x4xf32>
    %10 = arith.addf %5, %9 : vector<128x4xf32>
    %11 = vector.extract_strided_slice %1 {offsets = [0, 0, 0, 0], sizes = [2, 8, 8, 4], strides = [1, 1, 1, 1]} : vector<2x9x8x4xbf16> to vector<2x8x8x4xbf16>
    %12 = vector.shape_cast %11 : vector<2x8x8x4xbf16> to vector<128x4xbf16>
    %13 = vector.extract_strided_slice %4 {offsets = [4, 0], sizes = [4, 4], strides = [1, 1]} : vector<36x4xbf16> to vector<4x4xbf16>
    %cst_18 = arith.constant dense<0.000000e+00> : vector<128x4xf32>
    %14 = tpu.matmul %12, %13, %cst_18 {dimension_numbers = #tpu.dot_dimension_numbers<[1], [0], [0], [1], [0, 0, 1, 1], [], []>} : vector<128x4xbf16>, vector<4x4xbf16>, vector<128x4xf32> -> vector<128x4xf32>
    %15 = arith.addf %10, %14 : vector<128x4xf32>
    %16 = vector.extract_strided_slice %0 {offsets = [0, 0, 1, 0], sizes = [2, 8, 8, 4], strides = [1, 1, 1, 1]} : vector<2x9x9x4xbf16> to vector<2x8x8x4xbf16>
    %17 = vector.shape_cast %16 : vector<2x8x8x4xbf16> to vector<128x4xbf16>
    %18 = vector.extract_strided_slice %4 {offsets = [8, 0], sizes = [4, 4], strides = [1, 1]} : vector<36x4xbf16> to vector<4x4xbf16>
    %cst_19 = arith.constant dense<0.000000e+00> : vector<128x4xf32>
    %19 = tpu.matmul %17, %18, %cst_19 {dimension_numbers = #tpu.dot_dimension_numbers<[1], [0], [0], [1], [0, 0, 1, 1], [], []>} : vector<128x4xbf16>, vector<4x4xbf16>, vector<128x4xf32> -> vector<128x4xf32>
    %20 = arith.addf %15, %19 : vector<128x4xf32>
    %21 = vector.extract_strided_slice %2 {offsets = [0, 0, 0, 0], sizes = [2, 8, 8, 4], strides = [1, 1, 1, 1]} : vector<2x8x9x4xbf16> to vector<2x8x8x4xbf16>
    %22 = vector.shape_cast %21 : vector<2x8x8x4xbf16> to vector<128x4xbf16>
    %23 = vector.extract_strided_slice %4 {offsets = [12, 0], sizes = [4, 4], strides = [1, 1]} : vector<36x4xbf16> to vector<4x4xbf16>
    %cst_20 = arith.constant dense<0.000000e+00> : vector<128x4xf32>
    %24 = tpu.matmul %22, %23, %cst_20 {dimension_numbers = #tpu.dot_dimension_numbers<[1], [0], [0], [1], [0, 0, 1, 1], [], []>} : vector<128x4xbf16>, vector<4x4xbf16>, vector<128x4xf32> -> vector<128x4xf32>
    %25 = arith.addf %20, %24 : vector<128x4xf32>
    %26 = vector.shape_cast %3 : vector<2x8x8x4xbf16> to vector<128x4xbf16>
    %27 = vector.extract_strided_slice %4 {offsets = [16, 0], sizes = [4, 4], strides = [1, 1]} : vector<36x4xbf16> to vector<4x4xbf16>
    %cst_21 = arith.constant dense<0.000000e+00> : vector<128x4xf32>
    %28 = tpu.matmul %26, %27, %cst_21 {dimension_numbers = #tpu.dot_dimension_numbers<[1], [0], [0], [1], [0, 0, 1, 1], [], []>} : vector<128x4xbf16>, vector<4x4xbf16>, vector<128x4xf32> -> vector<128x4xf32>
    %29 = arith.addf %25, %28 : vector<128x4xf32>
    %30 = vector.extract_strided_slice %2 {offsets = [0, 0, 1, 0], sizes = [2, 8, 8, 4], strides = [1, 1, 1, 1]} : vector<2x8x9x4xbf16> to vector<2x8x8x4xbf16>
    %31 = vector.shape_cast %30 : vector<2x8x8x4xbf16> to vector<128x4xbf16>
    %32 = vector.extract_strided_slice %4 {offsets = [20, 0], sizes = [4, 4], strides = [1, 1]} : vector<36x4xbf16> to vector<4x4xbf16>
    %cst_22 = arith.constant dense<0.000000e+00> : vector<128x4xf32>
    %33 = tpu.matmul %31, %32, %cst_22 {dimension_numbers = #tpu.dot_dimension_numbers<[1], [0], [0], [1], [0, 0, 1, 1], [], []>} : vector<128x4xbf16>, vector<4x4xbf16>, vector<128x4xf32> -> vector<128x4xf32>
    %34 = arith.addf %29, %33 : vector<128x4xf32>
    %35 = vector.extract_strided_slice %0 {offsets = [0, 1, 0, 0], sizes = [2, 8, 8, 4], strides = [1, 1, 1, 1]} : vector<2x9x9x4xbf16> to vector<2x8x8x4xbf16>
    %36 = vector.shape_cast %35 : vector<2x8x8x4xbf16> to vector<128x4xbf16>
    %37 = vector.extract_strided_slice %4 {offsets = [24, 0], sizes = [4, 4], strides = [1, 1]} : vector<36x4xbf16> to vector<4x4xbf16>
    %cst_23 = arith.constant dense<0.000000e+00> : vector<128x4xf32>
    %38 = tpu.matmul %36, %37, %cst_23 {dimension_numbers = #tpu.dot_dimension_numbers<[1], [0], [0], [1], [0, 0, 1, 1], [], []>} : vector<128x4xbf16>, vector<4x4xbf16>, vector<128x4xf32> -> vector<128x4xf32>
    %39 = arith.addf %34, %38 : vector<128x4xf32>
    %40 = vector.extract_strided_slice %1 {offsets = [0, 1, 0, 0], sizes = [2, 8, 8, 4], strides = [1, 1, 1, 1]} : vector<2x9x8x4xbf16> to vector<2x8x8x4xbf16>
    %41 = vector.shape_cast %40 : vector<2x8x8x4xbf16> to vector<128x4xbf16>
    %42 = vector.extract_strided_slice %4 {offsets = [28, 0], sizes = [4, 4], strides = [1, 1]} : vector<36x4xbf16> to vector<4x4xbf16>
    %cst_24 = arith.constant dense<0.000000e+00> : vector<128x4xf32>
    %43 = tpu.matmul %41, %42, %cst_24 {dimension_numbers = #tpu.dot_dimension_numbers<[1], [0], [0], [1], [0, 0, 1, 1], [], []>} : vector<128x4xbf16>, vector<4x4xbf16>, vector<128x4xf32> -> vector<128x4xf32>
    %44 = arith.addf %39, %43 : vector<128x4xf32>
    %45 = vector.extract_strided_slice %0 {offsets = [0, 1, 1, 0], sizes = [2, 8, 8, 4], strides = [1, 1, 1, 1]} : vector<2x9x9x4xbf16> to vector<2x8x8x4xbf16>
    %46 = vector.shape_cast %45 : vector<2x8x8x4xbf16> to vector<128x4xbf16>
    %47 = vector.extract_strided_slice %4 {offsets = [32, 0], sizes = [4, 4], strides = [1, 1]} : vector<36x4xbf16> to vector<4x4xbf16>
    %cst_25 = arith.constant dense<0.000000e+00> : vector<128x4xf32>
    %48 = tpu.matmul %46, %47, %cst_25 {dimension_numbers = #tpu.dot_dimension_numbers<[1], [0], [0], [1], [0, 0, 1, 1], [], []>} : vector<128x4xbf16>, vector<4x4xbf16>, vector<128x4xf32> -> vector<128x4xf32>
    %49 = arith.addf %44, %48 : vector<128x4xf32>
    %c0_26 = arith.constant 0 : index
    %c0_27 = arith.constant 0 : index
    %50 = vector.load %arg7[%c0_26, %c0_27] : memref<1x4xf32, #tpu.memory_space<vmem>>, vector<1x4xf32>
    %51 = vector.broadcast %50 : vector<1x4xf32> to vector<128x4xf32>
    %52 = arith.addf %49, %51 : vector<128x4xf32>
    %53 = vector.shape_cast %52 : vector<128x4xf32> to vector<2x8x8x4xf32>
    %c0_28 = arith.constant 0 : index
    %c0_29 = arith.constant 0 : index
    %c0_30 = arith.constant 0 : index
    %c0_31 = arith.constant 0 : index
    %54 = vector.load %arg8[%c0_28, %c0_29, %c0_30, %c0_31] : memref<2x8x8x4xf32, #tpu.memory_space<vmem>>, vector<2x8x8x4xf32>
    tpu.vector_store %arg8[%c0_28, %c0_29, %c0_30, %c0_31], %53 {strides = array<i32>} : memref<2x8x8x4xf32, #tpu.memory_space<vmem>>, vector<2x8x8x4xf32>,
    return
  }
  func.func @transform_0(%arg0: i32, %arg1: i32) -> (i32, i32, i32, i32) {
    %c0_i32 = arith.constant 0 : i32
    %c0_i32_0 = arith.constant 0 : i32
    %c0_i32_1 = arith.constant 0 : i32
    %c0_i32_2 = arith.constant 0 : i32
    return %arg1, %c0_i32, %c0_i32_0, %c0_i32_1 : i32, i32, i32, i32
  }
  func.func @transform_1(%arg0: i32, %arg1: i32) -> (i32, i32, i32, i32) {
    %c0_i32 = arith.constant 0 : i32
    %c0_i32_0 = arith.constant 0 : i32
    %c0_i32_1 = arith.constant 0 : i32
    %c0_i32_2 = arith.constant 0 : i32
    return %arg1, %c0_i32, %c0_i32_0, %c0_i32_1 : i32, i32, i32, i32
  }
  func.func @transform_2(%arg0: i32, %arg1: i32) -> (i32, i32, i32, i32) {
    %c0_i32 = arith.constant 0 : i32
    %c0_i32_0 = arith.constant 0 : i32
    %c0_i32_1 = arith.constant 0 : i32
    %c0_i32_2 = arith.constant 0 : i32
    return %arg1, %c0_i32, %c0_i32_0, %c0_i32_1 : i32, i32, i32, i32
  }
  func.func @transform_3(%arg0: i32, %arg1: i32) -> (i32, i32, i32, i32) {
    %c0_i32 = arith.constant 0 : i32
    %c0_i32_0 = arith.constant 0 : i32
    %c0_i32_1 = arith.constant 0 : i32
    %c0_i32_2 = arith.constant 0 : i32
    return %arg1, %c0_i32, %c0_i32_0, %c0_i32_1 : i32, i32, i32, i32
  }
  func.func @transform_4(%arg0: i32, %arg1: i32) -> (i32, i32) {
    %c0_i32 = arith.constant 0 : i32
    %c0_i32_0 = arith.constant 0 : i32
    return %c0_i32, %arg0 : i32, i32
  }
  func.func @transform_5(%arg0: i32, %arg1: i32) -> (i32, i32) {
    %c0_i32 = arith.constant 0 : i32
    %c0_i32_0 = arith.constant 0 : i32
    return %c0_i32, %arg0 : i32, i32
  }
  func.func @transform_6(%arg0: i32, %arg1: i32) -> (i32, i32, i32, i32) {
    %c0_i32 = arith.constant 0 : i32
    %c0_i32_0 = arith.constant 0 : i32
    %c0_i32_1 = arith.constant 0 : i32
    return %arg1, %c0_i32, %c0_i32_0, %arg0 : i32, i32, i32, i32
  }
}

</mosaic_0001>

<bundles_post_ra>
// kernel: downsample_conv2d.1
= control target key start
LH: loop header
LB: loop body
LE: loop exit
PB: predicated region body
PF: predicated region fallthrough
CT: control target
= control target key end

     0   :  { %vm200_vm0 = vcmask 1041408   ;;  %vm175_vm1 = vcmask 31744   ;;  %vm465_vm2 = vsmask.f32 3328  ;;  %vm466_vm3 = vsmask.f32 7440  ;;  %s3759_s4 = inlined_call_operand.vmem [shape: bf16[36,4], index: 4, kind: input, shape index: {}]   ;;  %s3760_s1 = inlined_call_operand.vmem [shape: bf16[2,9,8,4], index: 1, kind: input, shape index: {}]   ;;  %s3761_s0 = inlined_call_operand.vmem [shape: bf16[2,9,9,4], index: 0, kind: input, shape index: {}]   ;;  %s3762_s3 = inlined_call_operand.vmem [shape: bf16[2,8,8,4], index: 3, kind: input, shape index: {}]   ;;  %s3763_s2 = inlined_call_operand.vmem [shape: bf16[2,8,9,4], index: 2, kind: input, shape index: {}]   ;;  %s3764_s5 = inlined_call_operand.vmem [shape: f32[1,4], index: 5, kind: input, shape index: {}]   ;;  %s3765_s6 = inlined_call_operand.vmem [shape: f32[2,8,8,4], index: 6, kind: output, shape index: {}]  }
   0x1   :  { %v126_v0 = vld [vmem:[%s3759_s4] sm:$0xf]  ;;  %v2647_v2 = vld [vmem:[%s3760_s1 + $0x4] sm:$0xf]  ;;  %v2652_v4 = vld [vmem:[%s3760_s1 + $0x8] sm:$0xf] }
   0x2   :  { %v60_v1 = vld [vmem:[%s3760_s1] sm:$0xf]  ;;  %3784 = vst [vmem:[#allocation2_spill] sm:$0xff] %v2647_v2  ;;  %v2149_v3 = vcombine.low %v126_v0, %v126_v0  ;;  %3785 = vst [vmem:[#allocation3_spill] sm:$0xff] %v2652_v4  ;;  %v2657_v5 = vld [vmem:[%s3760_s1 + $0xc] sm:$0xf] }
   0x3   :  { %3786 = vst [vmem:[#allocation4_spill] sm:$0xff] %v2657_v5  ;;  %v2662_v6 = vld [vmem:[%s3760_s1 + $0x10] sm:$0xf]  ;;  %v2141_v7 = vcombine.low %v60_v1, %v2647_v2  ;;  %v69_v10 = vld [vmem:[%s3760_s1 + $0x24] sm:$0xf]  ;;  %v2142_v22 = vcombine.low %v2652_v4, %v2657_v5  ;;  %v366_v24 = vsel %vm200_vm0, %v126_v0, 0  ;;  %vm2793_vm4 = vmor %vm465_vm2, %vm466_vm3 }
   0x4   :  { %3787 = vst [vmem:[#allocation5_spill] sm:$0xff] %v2662_v6  ;;  %v2675_v11 = vld [vmem:[%s3760_s1 + $0x28] sm:$0xf]  ;;  %v2680_v12 = vld [vmem:[%s3760_s1 + $0x2c] sm:$0xf]  ;;  %v174_v13 = vrot.slane %v2149_v3, 2 }
   0x5   :  { %3788 = vst [vmem:[#allocation6_spill] sm:$0xff] %v2675_v11  ;;  %3789 = vst [vmem:[#allocation7_spill] sm:$0xff] %v2680_v12  ;;  %2373 = vmatprep.mubr.msk.bf16.mxu0 %vm175_vm1, %v2141_v7  ;;  %v72_v14 = vld [vmem:[%s3760_s1 + $0x30] sm:$0xf]  ;;  %v2145_v15 = vcombine.low %v69_v10, %v2675_v11  ;;  %v127_v17 = vld [vmem:[%s3759_s4 + $0x4] sm:$0xf] }
   0x6   :  { %v2198_v18 = vcombine.low %v127_v17, %v127_v17  ;;  %v2695_v19 = vld [vmem:[%s3760_s1 + $0x14] sm:$0xf]  ;;  %2535 = vmatprep.subr.msk.bf16.mxu0 %vm200_vm0, %v174_v13  ;;  %2536 = vmatprep.subr.msk.bf16.mxu1 %vm200_vm0, %v174_v13  ;;  %v202_v21 = vsel %vm200_vm0, %v174_v13, 0  ;;  %v2146_v23 = vcombine.low %v2680_v12, %v72_v14  ;;  %v74_v25 = vld [vmem:[%s3760_s1 + $0x38] sm:$0xf]  ;;  %v741_v28 = vsel %vm200_vm0, %v127_v17, 0 }
   0x7   :  { %3790 = vst [vmem:[#allocation8_spill] sm:$0xff] %v2695_v19  ;;  %v73_v20 = vld [vmem:[%s3760_s1 + $0x34] sm:$0xf]  ;;  %v2713_v26 = vld [vmem:[%s3760_s1 + $0x18] sm:$0xf]  ;;  %2372 = vmatpush3.bf16.msra.mxu0 %v202_v21  ;;  %2534 = vmatpush3.bf16.msra.mxu1 %v202_v21  ;;  %v2143_v32 = vcombine.low %v2662_v6, %v2695_v19 }
   0x8   :  { %3791 = vst [vmem:[#allocation9_spill] sm:$0xff] %v2713_v26  ;;  %v899_v27 = vrot.slane %v2198_v18, 2  ;;  %v2719_v29 = vld [vmem:[%s3760_s1 + $0x1c] sm:$0xf]  ;;  %2381 = vmatprep.mubr.msk.bf16.mxu1 %vm175_vm1, %v2145_v15  ;;  %2537 = vmatprep.subr.msk.bf16.mxu1 %vm200_vm0, %v126_v0  ;;  %v2147_v33 = vcombine.low %v73_v20, %v74_v25  ;;  %v76_v35 = vld [vmem:[%s3760_s1 + $0x40] sm:$0xf] }
   0x9   :  { %v2724_v30 = vld [vmem:[%s3760_s1 + $0x3c] sm:$0xf]  ;;  %v2144_v34 = vcombine.low %v2713_v26, %v2719_v29  ;;  %v2740_v36 = vld [vmem:[%s3761_s0] sm:$0xf]  ;;  %v2745_v37 = vld [vmem:[%s3761_s0 + $0x8] sm:$0xf]  ;;  %2538 = vmatprep.subr.msk.bf16.mxu0 %vm200_vm0, %v127_v17 }
   0xa   :  { %v2148_v38 = vcombine.low %v2724_v30, %v76_v35  ;;  %v2158_v39 = vcombine.low %v2740_v36, %v2745_v37  ;;  %v469_v40 = vshrl.u32 %v2740_v36, 16  ;;  %v472_v41 = vshll.u32 %v2740_v36, 16  ;;  %v25_v42 = vld [vmem:[%s3761_s0 + $0x4] sm:$0x1]  ;;  %v27_v43 = vld [vmem:[%s3761_s0 + $0xc] sm:$0x1]  ;;  %2374 = vmatmul.mubr.msk.bf16.vlgmr.msra.gmra.mxu0 %vm175_vm1, %v2142_v22  ;;  %2382 = vmatmul.mubr.msk.bf16.vlgmr.msra.gmra.mxu1 %vm175_vm1, %v2146_v23 }
   0xb   :  { %v483_v44 = vshrl.u32 %v2745_v37, 16  ;;  %v486_v45 = vshll.u32 %v2745_v37, 16  ;;  %v478_v46 = vshll.u32 %v25_v42, 16  ;;  %v492_v47 = vshll.u32 %v27_v43, 16  ;;  %v2766_v48 = vld [vmem:[%s3761_s0 + $0x10] sm:$0xf]  ;;  %2390 = vmatpush3.bf16.msra.mxu1 %v366_v24  ;;  %2408 = vmatpush3.bf16.msra.mxu0 %v741_v28 }
   0xc   :  { %v471_v49 = vrot.slane %v469_v40, 4  ;;  %v474_v50 = vrot.slane %v472_v41, 5  ;;  %v2771_v51 = vld [vmem:[%s3761_s0 + $0x18] sm:$0xf]  ;;  %v497_v52 = vshrl.u32 %v2766_v48, 16  ;;  %v500_v53 = vshll.u32 %v2766_v48, 16  ;;  %2377 = vmatprep.mubr.msk.bf16.mxu0 %vm175_vm1, %v2143_v32  ;;  %2385 = vmatprep.mubr.msk.bf16.mxu1 %vm175_vm1, %v2147_v33 }
   0xd   :  { %v480_v54 = vrot.slane %v478_v46, 5  ;;  %v485_v55 = vrot.slane %v483_v44, 4  ;;  %v488_v56 = vrot.slane %v486_v45, 5  ;;  %v494_v57 = vrot.slane %v492_v47, 5  ;;  %v29_v58 = vld [vmem:[%s3761_s0 + $0x14] sm:$0x1]  ;;  %2539 = vmatprep.subr.msk.bf16.mxu1 %vm200_vm0, %v899_v27 }
   0xe   :  { %v475_v59 = vor.u32 %v474_v50, %v471_v49  ;;  %v2159_v60 = vcombine.low %v2766_v48, %v2771_v51  ;;  %v511_v61 = vshrl.u32 %v2771_v51, 16  ;;  %v514_v62 = vshll.u32 %v2771_v51, 16  ;;  %v31_v63 = vld [vmem:[%s3761_s0 + $0x1c] sm:$0x1]  ;;  %v128_v0 = vld [vmem:[%s3759_s4 + $0x8] sm:$0xf] }
   0xf   :  { %v489_v3 = vor.u32 %v488_v56, %v485_v55  ;;  %v499_v7 = vrot.slane %v497_v52, 4  ;;  %v502_v10 = vrot.slane %v500_v53, 5  ;;  %v506_v13 = vshll.u32 %v29_v58, 16  ;;  %2540 = vmatprep.subr.msk.bf16.mxu0 %vm200_vm0, %v128_v0  ;;  %v2802_v24 = vld [vmem:[%s3761_s0 + $0x20] sm:$0xf] }
  0x10   :  { %v476_v14 = vrot.slane %v475_v59, 4  ;;  %v513_v15 = vrot.slane %v511_v61, 4  ;;  %v516_v17 = vrot.slane %v514_v62, 5  ;;  %v520_v18 = vshll.u32 %v31_v63, 16  ;;  %v2809_v32 = vld [vmem:[%s3761_s0 + $0x28] sm:$0xf] }
  0x11   :  { %v490_v20 = vrot.slane %v489_v3, 4  ;;  %v503_v21 = vor.u32 %v502_v10, %v499_v7  ;;  %v508_v22 = vrot.slane %v506_v13, 5  ;;  %v925_v23 = vsel %vm200_vm0, %v899_v27, 0  ;;  %v33_v40 = vld [vmem:[%s3761_s0 + $0x24] sm:$0x1] }
  0x12   :  { %v481_v25 = vsel %vm2793_vm4, %v476_v14, %v480_v54  ;;  %v517_v28 = vor.u32 %v516_v17, %v513_v15  ;;  %v522_v29 = vrot.slane %v520_v18, 5  ;;  %v2231_v30 = vcombine.low %v128_v0, %v128_v0  ;;  %2378 = vmatmul.mubr.msk.bf16.gmra.mxu0 %vm175_vm1, %v2144_v34  ;;  %2386 = vmatmul.mubr.msk.bf16.gmra.mxu1 %vm175_vm1, %v2148_v38  ;;  %v35_v43 = vld [vmem:[%s3761_s0 + $0x2c] sm:$0x1]  ;;  %v2841_v47 = vld [vmem:[%s3761_s0 + $0x30] sm:$0xf] }
  0x13   :  { %v2815_v27 = vsel %vm2793_vm4, %v490_v20, %v494_v57  ;;  %v504_v33 = vrot.slane %v503_v21, 4  ;;  %v1105_v35 = vsel %vm200_vm0, %v128_v0, 0  ;;  %v2160_v36 = vcombine.low %v2802_v24, %v2809_v32  ;;  %2391 = vmatprep.mubr.msk.bf16.mxu1 %vm175_vm1, %v2158_v39  ;;  %v2853_v54 = vld [vmem:[%s3761_s0 + $0x38] sm:$0xf]  ;;  %v37_v59 = vld [vmem:[%s3761_s0 + $0x34] sm:$0x1] }
  0x14   :  { %3794 = vst [vmem:[#allocation10_spill] sm:$0xff] %v2815_v27  ;;  %v2174_v34 = vcombine.low %v481_v25, %v2815_v27  ;;  %v518_v41 = vrot.slane %v517_v28, 4  ;;  %v2825_v38 = vrot.slane %v2231_v30, 2  ;;  %v525_v42 = vshrl.u32 %v2802_v24, 16  ;;  %3797 = vst [vmem:[#allocation13_spill] sm:$0xff] %v2853_v54 }
  0x15   :  { %v2833_v44 = vsel %vm2793_vm4, %v504_v33, %v508_v22  ;;  %v528_v45 = vshll.u32 %v2802_v24, 16  ;;  %v539_v46 = vshrl.u32 %v2809_v32, 16  ;;  %v542_v39 = vshll.u32 %v2809_v32, 16  ;;  %v39_v14 = vld [vmem:[%s3761_s0 + $0x3c] sm:$0x1] }
  0x16   :  { %3795 = vst [vmem:[#allocation11_spill] sm:$0xff] %v2833_v44  ;;  %2409 = vmatprep.mubr.msk.bf16.mxu0 %vm175_vm1, %v2174_v34  ;;  %v2846_v49 = vsel %vm2793_vm4, %v518_v41, %v522_v29  ;;  %v527_v52 = vrot.slane %v525_v42, 4  ;;  %v534_v53 = vshll.u32 %v33_v40, 16  ;;  %v548_v62 = vshll.u32 %v35_v43, 16  ;;  %v42_v21 = vld [vmem:[%s3761_s0 + $0x48] sm:$0xf] }
  0x17   :  { %3796 = vst [vmem:[#allocation12_spill] sm:$0xff] %v2846_v49  ;;  %v2175_v55 = vcombine.low %v2833_v44, %v2846_v49  ;;  %v530_v56 = vrot.slane %v528_v45, 5  ;;  %v541_v57 = vrot.slane %v539_v46, 4  ;;  %v544_v58 = vrot.slane %v542_v39, 5  ;;  %v2880_v30 = vld [vmem:[%s3761_s0 + $0x50] sm:$0xf] }
  0x18   :  { %v536_v61 = vrot.slane %v534_v53, 5  ;;  %v2161_v63 = vcombine.low %v2841_v47, %v2853_v54  ;;  %v553_v0 = vshrl.u32 %v2841_v47, 16  ;;  %v556_v10 = vshll.u32 %v2841_v47, 16 }
  0x19   :  { %v531_v3 = vor.u32 %v530_v56, %v527_v52  ;;  %v545_v7 = vor.u32 %v544_v58, %v541_v57  ;;  %v567_v13 = vshrl.u32 %v2853_v54, 16  ;;  %v550_v15 = vrot.slane %v548_v62, 5  ;;  %v2908_v58 = vld [vmem:[%s3761_s0 + $0x58] sm:$0xf] }
  0x1a   :  { %v570_v17 = vshll.u32 %v2853_v54, 16  ;;  %v555_v18 = vrot.slane %v553_v0, 4  ;;  %v562_v20 = vshll.u32 %v37_v59, 16  ;;  %2392 = vmatmul.mubr.msk.bf16.vlgmr.msra.gmra.mxu1 %vm175_vm1, %v2159_v60  ;;  %2410 = vmatmul.mubr.msk.bf16.vlgmr.msra.gmra.mxu0 %vm175_vm1, %v2175_v55  ;;  %v558_v28 = vrot.slane %v556_v10, 5 }
  0x1b   :  { %v532_v22 = vrot.slane %v531_v3, 4  ;;  %v546_v25 = vrot.slane %v545_v7, 4  ;;  %v569_v29 = vrot.slane %v567_v13, 4  ;;  %2426 = vmatpush3.bf16.msra.mxu1 %v925_v23  ;;  %2444 = vmatpush3.bf16.msra.mxu0 %v1105_v35  ;;  %v576_v34 = vshll.u32 %v39_v14, 16  ;;  %v43_v23 = vld [vmem:[%s3761_s0 + $0x4c] sm:$0x1] }
  0x1c   :  { %v564_v33 = vrot.slane %v562_v20, 5  ;;  %v572_v40 = vrot.slane %v570_v17, 5  ;;  %v2162_v41 = vcombine.low %v42_v21, %v2880_v30  ;;  %2395 = vmatprep.mubr.msk.bf16.mxu1 %vm175_vm1, %v2160_v36  ;;  %v559_v43 = vor.u32 %v558_v28, %v555_v18  ;;  %v45_v35 = vld [vmem:[%s3761_s0 + $0x54] sm:$0x1]  ;;  %2541 = vmatprep.subr.msk.bf16.mxu1 %vm200_vm0, %v2825_v38  ;;  %v2915_v3 = vld [vmem:[%s3761_s0 + $0x60] sm:$0xf] }
  0x1d   :  { %v2886_v60 = vsel %vm2793_vm4, %v532_v22, %v536_v61  ;;  %v2890_v42 = vsel %vm2793_vm4, %v546_v25, %v550_v15  ;;  %v581_v45 = vshrl.u32 %v42_v21, 16  ;;  %v578_v52 = vrot.slane %v576_v34, 5  ;;  %v47_v15 = vld [vmem:[%s3761_s0 + $0x5c] sm:$0x1]  ;;  %v49_v17 = vld [vmem:[%s3761_s0 + $0x64] sm:$0x1] }
  0x1e   :  { %3798 = vst [vmem:[#allocation14_spill] sm:$0xff] %v2886_v60  ;;  %3799 = vst [vmem:[#allocation15_spill] sm:$0xff] %v2890_v42  ;;  %v2176_v36 = vcombine.low %v2886_v60, %v2890_v42  ;;  %v573_v39 = vor.u32 %v572_v40, %v569_v29  ;;  %v560_v53 = vrot.slane %v559_v43, 4  ;;  %v584_v56 = vshll.u32 %v42_v21, 16  ;;  %v2941_v40 = vld [vmem:[%s3761_s0 + $0x68] sm:$0xf] }
  0x1f   :  { %v583_v55 = vrot.slane %v581_v45, 4  ;;  %v595_v57 = vshrl.u32 %v2880_v30, 16  ;;  %v598_v61 = vshll.u32 %v2880_v30, 16  ;;  %v590_v62 = vshll.u32 %v43_v23, 16  ;;  %v2949_v23 = vld [vmem:[%s3761_s0 + $0x70] sm:$0xf] }
  0x20   :  { %2413 = vmatprep.mubr.msk.bf16.mxu0 %vm175_vm1, %v2176_v36  ;;  %v574_v59 = vrot.slane %v573_v39, 4  ;;  %v604_v0 = vshll.u32 %v45_v35, 16  ;;  %v2919_v7 = vsel %vm2793_vm4, %v560_v53, %v564_v33  ;;  %v586_v10 = vrot.slane %v584_v56, 5  ;;  %v2578_v42 = vld [vmem:[%s3762_s3 + $0x20] sm:$0xff]  }
  0x21   :  { %3800 = vst [vmem:[#allocation16_spill] sm:$0xff] %v2919_v7  ;;  %v597_v13 = vrot.slane %v595_v57, 4  ;;  %v2163_v14 = vcombine.low %v2908_v58, %v2915_v3  ;;  %v592_v20 = vrot.slane %v590_v62, 5  ;;  %v600_v21 = vrot.slane %v598_v61, 5 }
  0x22   :  { %v2931_v18 = vsel %vm2793_vm4, %v574_v59, %v578_v52  ;;  %v606_v22 = vrot.slane %v604_v0, 5  ;;  %2396 = vmatmul.mubr.msk.bf16.gmra.mxu1 %vm175_vm1, %v2161_v63  ;;  %v587_v28 = vor.u32 %v586_v10, %v583_v55  ;;  %v609_v29 = vshrl.u32 %v2908_v58, 16  ;;  %v53_v10 = vld [vmem:[%s3761_s0 + $0x74] sm:$0x1] }
  0x23   :  { %3801 = vst [vmem:[#allocation17_spill] sm:$0xff] %v2931_v18  ;;  %v2177_v25 = vcombine.low %v2919_v7, %v2931_v18  ;;  %v612_v33 = vshll.u32 %v2908_v58, 16  ;;  %2399 = vmatprep.mubr.msk.bf16.mxu1 %vm175_vm1, %v2162_v41  ;;  %v601_v34 = vor.u32 %v600_v21, %v597_v13  ;;  %v623_v43 = vshrl.u32 %v2915_v3, 16  ;;  %v51_v41 = vld [vmem:[%s3761_s0 + $0x6c] sm:$0x1] }
  0x24   :  { %v626_v63 = vshll.u32 %v2915_v3, 16  ;;  %v618_v45 = vshll.u32 %v47_v15, 16  ;;  %v588_v35 = vrot.slane %v587_v28, 4  ;;  %v611_v36 = vrot.slane %v609_v29, 4  ;;  %v2965_v13 = vld [vmem:[%s3759_s4 + $0xc] sm:$0xf] }
  0x25   :  { %2414 = vmatmul.mubr.msk.bf16.gmra.mxu0 %vm175_vm1, %v2177_v25  ;;  %v614_v39 = vrot.slane %v612_v33, 5  ;;  %v632_v52 = vshll.u32 %v49_v17, 16  ;;  %v602_v53 = vrot.slane %v601_v34, 4  ;;  %v625_v56 = vrot.slane %v623_v43, 4  ;;  %v2976_v25 = vld [vmem:[%s3761_s0 + $0x78] sm:$0xf]  ;;  %2542 = vmatprep.subr.msk.bf16.mxu0 %vm200_vm0, %v2965_v13 }
  0x26   :  { %v620_v55 = vrot.slane %v618_v45, 5  ;;  %v628_v57 = vrot.slane %v626_v63, 5  ;;  %v593_v59 = vsel %vm2793_vm4, %v588_v35, %v592_v20  ;;  %v2164_v0 = vcombine.low %v2941_v40, %v2949_v23  ;;  %v2986_v34 = vld [vmem:[%s3761_s0 + $0x80] sm:$0xf] }
  0x27   :  { %v615_v61 = vor.u32 %v614_v39, %v611_v36  ;;  %v634_v62 = vrot.slane %v632_v52, 5  ;;  %v2969_v15 = vsel %vm2793_vm4, %v602_v53, %v606_v22  ;;  %v637_v20 = vshrl.u32 %v2941_v40, 16  ;;  %3802 = vst [vmem:[#allocation18_spill] sm:$0xff] %v2986_v34  ;;  %v55_v36 = vld [vmem:[%s3761_s0 + $0x7c] sm:$0x1] }
  0x28   :  { %v629_v17 = vor.u32 %v628_v57, %v625_v56  ;;  %v640_v21 = vshll.u32 %v2941_v40, 16  ;;  %v2178_v28 = vcombine.low %v593_v59, %v2969_v15  ;;  %v651_v33 = vshrl.u32 %v2949_v23, 16  ;;  %v57_v57 = vld [vmem:[%s3761_s0 + $0x84] sm:$0x1] }
  0x29   :  { %v616_v29 = vrot.slane %v615_v61, 4  ;;  %v654_v22 = vshll.u32 %v2949_v23, 16  ;;  %v639_v63 = vrot.slane %v637_v20, 4  ;;  %v646_v35 = vshll.u32 %v51_v41, 16 }
  0x2a   :  { %v630_v43 = vrot.slane %v629_v17, 4  ;;  %v642_v45 = vrot.slane %v640_v21, 5  ;;  %2417 = vmatprep.mubr.msk.bf16.mxu0 %vm175_vm1, %v2178_v28  ;;  %2400 = vmatmul.mubr.msk.bf16.gmra.mxu1 %vm175_vm1, %v2163_v14  ;;  %v653_v52 = vrot.slane %v651_v33, 4  ;;  %v660_v56 = vshll.u32 %v53_v10, 16  ;;  %v3013_v21 = vld [vmem:[%s3763_s2] sm:$0xf] }
  0x2b   :  { %v2995_v39 = vsel %vm2793_vm4, %v616_v29, %v620_v55  ;;  %v656_v53 = vrot.slane %v654_v22, 5  ;;  %2403 = vmatprep.mubr.msk.bf16.mxu1 %vm175_vm1, %v2164_v0  ;;  %v648_v61 = vrot.slane %v646_v35, 5  ;;  %v2165_v14 = vcombine.low %v2976_v25, %v2986_v34 }
  0x2c   :  { %v3002_v41 = vsel %vm2793_vm4, %v630_v43, %v634_v62  ;;  %v643_v59 = vor.u32 %v642_v45, %v639_v63  ;;  %v662_v10 = vrot.slane %v660_v56, 5  ;;  %v665_v20 = vshrl.u32 %v2976_v25, 16  ;;  %v3018_v62 = vld [vmem:[%s3763_s2 + $0x8] sm:$0xf] }
  0x2d   :  { %v2179_v55 = vcombine.low %v2995_v39, %v3002_v41  ;;  %v657_v17 = vor.u32 %v656_v53, %v653_v52  ;;  %v668_v28 = vshll.u32 %v2976_v25, 16  ;;  %v679_v29 = vshrl.u32 %v2986_v34, 16 }
  0x2e   :  { %v644_v0 = vrot.slane %v643_v59, 4  ;;  %v682_v33 = vshll.u32 %v2986_v34, 16  ;;  %v667_v43 = vrot.slane %v665_v20, 4  ;;  %v674_v63 = vshll.u32 %v55_v36, 16 }
  0x2f   :  { %2418 = vmatmul.mubr.msk.bf16.gmra.mxu0 %vm175_vm1, %v2179_v55  ;;  %v658_v22 = vrot.slane %v657_v17, 4  ;;  %v688_v45 = vshll.u32 %v57_v57, 16  ;;  %v670_v52 = vrot.slane %v668_v28, 5  ;;  %v681_v53 = vrot.slane %v679_v29, 4  ;;  %v86_v28 = vld [vmem:[%s3763_s2 + $0x20] sm:$0xf] }
  0x30   :  { %v3026_v35 = vsel %vm2793_vm4, %v644_v0, %v648_v61  ;;  %v684_v56 = vrot.slane %v682_v33, 5  ;;  %v676_v16 = vrot.slane %v674_v63, 5  ;;  %v2190_v46 = vcombine.low %v3013_v21, %v3018_v62  ;;  %v82_v61 = vld [vmem:[%s3763_s2 + $0x10] sm:$0xf]  ;;  %v84_v0 = vld [vmem:[%s3763_s2 + $0x18] sm:$0xf] }
  0x31   :  { %v3030_v59 = vsel %vm2793_vm4, %v658_v22, %v662_v10  ;;  %v671_v36 = vor.u32 %v670_v52, %v667_v43  ;;  %v690_v17 = vrot.slane %v688_v45, 5  ;;  %v2569_v33 = vld [vmem:[%s3762_s3] sm:$0xff]   ;;  %v2191_v43 = vcombine.low %v82_v61, %v84_v0 }
  0x32   :  { %v2180_v55 = vcombine.low %v3026_v35, %v3030_v59  ;;  %v685_v57 = vor.u32 %v684_v56, %v681_v53  ;;  %2404 = vmatmul.mubr.msk.bf16.gmra.mxu1 %vm175_vm1, %v2165_v14  ;;  %v3051_v14 = vld [vmem:[%s3763_s2 + $0x28] sm:$0xf]  ;;  %v2264_v63 = vcombine.low %v2965_v13, %v2965_v13  ;;  %v1497_v52 = vsel %vm200_vm0, %v2825_v38, 0  ;;  %v90_v56 = vld [vmem:[%s3763_s2 + $0x30] sm:$0xf] }
  0x33   :  { %v672_v10 = vrot.slane %v671_v36, 4  ;;  %2427 = vmatprep.mubr.msk.bf16.mxu1 %vm175_vm1, %v2190_v46  ;;  %v2192_v45 = vcombine.low %v86_v28, %v3051_v14  ;;  %v2571_v36 = vld [vmem:[%s3762_s3 + $0x8] sm:$0xff]   ;;  %v92_v38 = vld [vmem:[%s3763_s2 + $0x38] sm:$0xf]  ;;  %v1291_v31 = vshrl.u32 %v3051_v14, 16  ;;  %v1294_v8 = vshll.u32 %v3051_v14, 16 }
  0x34   :  { %2421 = vmatprep.mubr.msk.bf16.mxu0 %vm175_vm1, %v2180_v55  ;;  %v686_v20 = vrot.slane %v685_v57, 4  ;;  %v3074_v53 = vrot.slane %v2264_v63, 2  ;;  %v1224_v55 = vshll.u32 %v3013_v21, 16  ;;  %v3091_v57 = vld [vmem:[%s3763_s2 + $0x40] sm:$0xf]  ;;  %v1266_v63 = vshll.u32 %v84_v0, 16 }
  0x35   :  { %v3055_v29 = vsel %vm2793_vm4, %v672_v10, %v676_v16  ;;  %v1221_v16 = vshrl.u32 %v3013_v21, 16  ;;  %v1235_v21 = vshrl.u32 %v3018_v62, 16  ;;  %v1238_v10 = vshll.u32 %v3018_v62, 16 }
  0x36   :  { %v3059_v46 = vsel %vm2793_vm4, %v686_v20, %v690_v17  ;;  %v1249_v20 = vshrl.u32 %v82_v61, 16  ;;  %v1277_v62 = vshrl.u32 %v86_v28, 16  ;;  %v2193_v9 = vcombine.low %v90_v56, %v92_v38 }
  0x37   :  { %3803 = vst [vmem:[#allocation19_spill] sm:$0xff] %v3059_v46  ;;  %v2181_v22 = vcombine.low %v3055_v29, %v3059_v46  ;;  %v3093_v17 = vrot.slane %v1221_v16, 4  ;;  %v2574_v16 = vld [vmem:[%s3762_s3 + $0x10] sm:$0xff]   ;;  %v1305_v50 = vshrl.u32 %v90_v56, 16  ;;  %v1308_v46 = vshll.u32 %v90_v56, 16 }
  0x38   :  { %v1237_v18 = vrot.slane %v1235_v21, 4  ;;  %v1240_v12 = vrot.slane %v1238_v10, 5  ;;  %v3119_v11 = vrot.slane %v1249_v20, 4  ;;  %v3125_v56 = vrot.slane %v1266_v63, 5  ;;  %v3141_v21 = vld [vmem:[%s3763_s2 + $0x60] sm:$0xf] }
  0x39   :  { %2422 = vmatmul.mubr.msk.bf16.gmra.mxu0 %vm175_vm1, %v2181_v22  ;;  %v1252_v22 = vshll.u32 %v82_v61, 16  ;;  %v3146_v10 = vld [vmem:[%s3763_s2 + $0x68] sm:$0xf]  ;;  %v3148_v20 = vrot.slane %v1277_v62, 4  ;;  %v1322_v63 = vshll.u32 %v92_v38, 16  ;;  %v3162_v49 = vrot.slane %v1305_v50, 4 }
  0x3a   :  { %2445 = vmatprep.mubr.msk.bf16.mxu0 %vm175_vm1, %v2569_v33  ;;  %2428 = vmatmul.mubr.msk.bf16.vlgmr.msra.gmra.mxu1 %vm175_vm1, %v2191_v43  ;;  %v3100_v33 = vld [vmem:[%s3763_s2 + $0x48] sm:$0xf]  ;;  %v1263_v43 = vshrl.u32 %v84_v0, 16  ;;  %v1226_v0 = vrot.slane %v1224_v55, 5  ;;  %v3131_v55 = vld [vmem:[%s3763_s2 + $0x50] sm:$0xf]  ;;  %v1241_v26 = vor.u32 %v1240_v12, %v1237_v18 }
  0x3b   :  { %2462 = vmatpush3.bf16.msra.mxu1 %v1497_v52  ;;  %2431 = vmatprep.mubr.msk.bf16.mxu1 %vm175_vm1, %v2192_v45  ;;  %v1649_v45 = vsel %vm200_vm0, %v2965_v13, 0  ;;  %v1280_v52 = vshll.u32 %v86_v28, 16  ;;  %v2194_v61 = vcombine.low %v3091_v57, %v3100_v33  ;;  %v3116_v13 = vld [vmem:[%s3759_s4 + $0x10] sm:$0x3]  ;;  %v1319_v28 = vshrl.u32 %v92_v38, 16 }
  0x3c   :  { %2543 = vmatprep.subr.msk.bf16.mxu1 %vm200_vm0, %v3074_v53  ;;  %v3121_v60 = vrot.slane %v1252_v22, 5  ;;  %v3123_v14 = vrot.slane %v1263_v43, 4  ;;  %v3152_v43 = vrot.slane %v1291_v31, 4  ;;  %v3164_v62 = vrot.slane %v1308_v46, 5  ;;  %v85_v12 = vld [vmem:[%s3763_s2 + $0x1c] sm:$0x1] }
  0x3d   :  { %v3150_v22 = vrot.slane %v1280_v52, 5  ;;  %v1333_v31 = vshrl.u32 %v3091_v57, 16  ;;  %v3171_v38 = vrot.slane %v1319_v28, 4  ;;  %v2576_v52 = vld [vmem:[%s3762_s3 + $0x18] sm:$0xff]   ;;  %v1347_v50 = vshrl.u32 %v3100_v33, 16 }
  0x3e   :  { %v1227_v46 = vor.u32 %v1226_v0, %v3093_v17  ;;  %v1361_v7 = vshrl.u32 %v3131_v55, 16  ;;  %v3184_v19 = vrot.slane %v1322_v63, 5  ;;  %v83_v17 = vld [vmem:[%s3763_s2 + $0x14] sm:$0x1]  ;;  %v1242_v27 = vrot.slane %v1241_v26, 4 }
  0x3f   :  { %v3199_v18 = vrot.slane %v1333_v31, 4  ;;  %v87_v26 = vld [vmem:[%s3763_s2 + $0x24] sm:$0x1] }
  0x41   :  { %2446 = vmatmul.mubr.msk.bf16.vlgmr.msra.gmra.mxu0 %vm175_vm1, %v2571_v36  ;;  %v3136_v36 = vld [vmem:[%s3763_s2 + $0x58] sm:$0xf] }
  0x42   :  { %2480 = vmatpush3.bf16.msra.mxu0 %v1649_v45  ;;  %2449 = vmatprep.mubr.msk.bf16.mxu0 %vm175_vm1, %v2574_v16  ;;  %v79_v45 = vld [vmem:[%s3763_s2 + $0x4] sm:$0x1]  ;;  %v3160_v16 = vrot.slane %v1294_v8, 5  ;;  %v1336_v8 = vshll.u32 %v3091_v57, 16  ;;  %v2195_v6 = vcombine.low %v3131_v55, %v3136_v36  ;;  %v2196_v57 = vcombine.low %v3141_v21, %v3146_v10 }
  0x43   :  { %2432 = vmatmul.mubr.msk.bf16.gmra.mxu1 %vm175_vm1, %v2193_v9  ;;  %2544 = vmatprep.subr.msk.bf16.mxu0 %vm200_vm0, %v3116_v13  ;;  %v81_v9 = vld [vmem:[%s3763_s2 + $0xc] sm:$0x1]  ;;  %v1230_v28 = vshll.u32 %v79_v45, 16  ;;  %v1364_v45 = vshll.u32 %v3131_v55, 16  ;;  %v1375_v31 = vshrl.u32 %v3136_v36, 16 }
  0x44   :  { %2435 = vmatprep.mubr.msk.bf16.mxu1 %vm175_vm1, %v2194_v61  ;;  %v1350_v61 = vshll.u32 %v3100_v33, 16  ;;  %v1244_v5 = vshll.u32 %v81_v9, 16  ;;  %v1228_v33 = vrot.slane %v1227_v46, 4  ;;  %v3201_v63 = vrot.slane %v1336_v8, 5 }
  0x45   :  { %v1232_v0 = vrot.slane %v1230_v28, 5  ;;  %v3203_v9 = vrot.slane %v1347_v50, 4  ;;  %v3211_v28 = vrot.slane %v1361_v7, 4  ;;  %v1255_v8 = vor.u32 %v3121_v60, %v3119_v11  ;;  %v3228_v7 = vld [vmem:[%s3763_s2 + $0x70] sm:$0xf] }
  0x46   :  { %v1246_v44 = vrot.slane %v1244_v5, 5  ;;  %v3208_v46 = vrot.slane %v1350_v61, 5  ;;  %v1378_v5 = vshll.u32 %v3136_v36, 16  ;;  %v1258_v50 = vshll.u32 %v83_v17, 16  ;;  %v2582_v36 = vld [vmem:[%s3762_s3 + $0x30] sm:$0xff]  }
  0x47   :  { %v1233_v55 = vsel %vm2793_vm4, %v1228_v33, %v1232_v0  ;;  %v1272_v60 = vshll.u32 %v85_v12, 16  ;;  %v1286_v61 = vshll.u32 %v87_v26, 16  ;;  %v3253_v33 = vrot.slane %v1375_v31, 4  ;;  %v91_v0 = vld [vmem:[%s3763_s2 + $0x34] sm:$0x1] }
  0x48   :  { %v1247_v11 = vsel %vm2793_vm4, %v1242_v27, %v1246_v44  ;;  %v3251_v44 = vrot.slane %v1364_v45, 5  ;;  %v1403_v12 = vshrl.u32 %v3146_v10, 16  ;;  %v1260_v26 = vrot.slane %v1258_v50, 5  ;;  %v93_v45 = vld [vmem:[%s3763_s2 + $0x3c] sm:$0x1] }
  0x49   :  { %2450 = vmatmul.mubr.msk.bf16.gmra.mxu0 %vm175_vm1, %v2576_v52  ;;  %v89_v52 = vld [vmem:[%s3763_s2 + $0x2c] sm:$0x1]  ;;  %v3266_v31 = vrot.slane %v1378_v5, 5  ;;  %v1288_v4 = vrot.slane %v1286_v61, 5  ;;  %v1311_v50 = vor.u32 %v3164_v62, %v3162_v49  ;;  %v1314_v5 = vshll.u32 %v91_v0, 16 }
  0x4a   :  { %2453 = vmatprep.mubr.msk.bf16.mxu0 %vm175_vm1, %v2578_v42  ;;  %v1269_v42 = vor.u32 %v3125_v56, %v3123_v14  ;;  %v1283_v14 = vor.u32 %v3150_v22, %v3148_v20  ;;  %v2580_v56 = vld [vmem:[%s3762_s3 + $0x28] sm:$0xff]   ;;  %v1300_v17 = vshll.u32 %v89_v52, 16  ;;  %v1389_v20 = vshrl.u32 %v3141_v21, 16 }
  0x4b   :  { %2436 = vmatmul.mubr.msk.bf16.gmra.mxu1 %vm175_vm1, %v2195_v6  ;;  %v3233_v6 = vld [vmem:[%s3763_s2 + $0x78] sm:$0xf]  ;;  %v1392_v22 = vshll.u32 %v3141_v21, 16  ;;  %v2223_v52 = vcombine.low %v1233_v55, %v1247_v11  ;;  %v1274_v21 = vrot.slane %v1272_v60, 5  ;;  %v1328_v55 = vshll.u32 %v93_v45, 16 }
  0x4c   :  { %2439 = vmatprep.mubr.msk.bf16.mxu1 %vm175_vm1, %v2196_v57  ;;  %v1297_v57 = vor.u32 %v3160_v16, %v3152_v43  ;;  %v2197_v43 = vcombine.low %v3228_v7, %v3233_v6  ;;  %v1256_v16 = vrot.slane %v1255_v8, 4  ;;  %v1270_v27 = vrot.slane %v1269_v42, 4  ;;  %v95_v8 = vld [vmem:[%s3763_s2 + $0x44] sm:$0x1]  ;;  %v97_v11 = vld [vmem:[%s3763_s2 + $0x4c] sm:$0x1] }
  0x4d   :  { %v1284_v34 = vrot.slane %v1283_v14, 4  ;;  %v1302_v54 = vrot.slane %v1300_v17, 5  ;;  %v1325_v42 = vor.u32 %v3184_v19, %v3171_v38  ;;  %v3280_v60 = vrot.slane %v1389_v20, 4 }
  0x4e   :  { %v1298_v2 = vrot.slane %v1297_v57, 4  ;;  %v3282_v14 = vrot.slane %v1392_v22, 5  ;;  %v1261_v49 = vsel %vm2793_vm4, %v1256_v16, %v1260_v26  ;;  %v1275_v19 = vsel %vm2793_vm4, %v1270_v27, %v1274_v21 }
  0x4f   :  { %v1339_v62 = vor.u32 %v3201_v63, %v3199_v18  ;;  %v1342_v38 = vshll.u32 %v95_v8, 16  ;;  %v1289_v61 = vsel %vm2793_vm4, %v1284_v34, %v1288_v4  ;;  %v1353_v17 = vor.u32 %v3208_v46, %v3203_v9 }
  0x50   :  { %v1303_v57 = vsel %vm2793_vm4, %v1298_v2, %v1302_v54  ;;  %v1356_v27 = vshll.u32 %v97_v11, 16  ;;  %v1312_v20 = vrot.slane %v1311_v50, 4  ;;  %v1316_v18 = vrot.slane %v1314_v5, 5  ;;  %v99_v2 = vld [vmem:[%s3763_s2 + $0x54] sm:$0x1] }
  0x51   :  { %2454 = vmatmul.mubr.msk.bf16.gmra.mxu0 %vm175_vm1, %v2580_v56  ;;  %v1406_v56 = vshll.u32 %v3146_v10, 16  ;;  %v2584_v10 = vld [vmem:[%s3762_s3 + $0x38] sm:$0xff]   ;;  %v1326_v63 = vrot.slane %v1325_v42, 4  ;;  %v1330_v22 = vrot.slane %v1328_v55, 5  ;;  %v1405_v0 = vrot.slane %v1403_v12, 4 }
  0x52   :  { %2457 = vmatprep.mubr.msk.bf16.mxu0 %vm175_vm1, %v2582_v36  ;;  %v2244_v36 = vcombine.low %v2880_v30, %v2908_v58  ;;  %v2224_v16 = vcombine.low %v1261_v49, %v1275_v19  ;;  %v2245_v26 = vcombine.low %v2915_v3, %v2941_v40  ;;  %v2225_v45 = vcombine.low %v1289_v61, %v1303_v57  ;;  %v101_v54 = vld [vmem:[%s3763_s2 + $0x5c] sm:$0x1]  ;;  %v103_v42 = vld [vmem:[%s3763_s2 + $0x64] sm:$0x1]  ;;  %v58_v58 = vld [vmem:[%s3761_s0 + $0x88] sm:$0xf] }
  0x53   :  { %2440 = vmatmul.mubr.msk.bf16.gmra.mxu1 %vm175_vm1, %v2197_v43  ;;  %v1417_v43 = vshrl.u32 %v3228_v7, 16  ;;  %v1340_v4 = vrot.slane %v1339_v62, 4  ;;  %v1344_v34 = vrot.slane %v1342_v38, 5  ;;  %v1408_v9 = vrot.slane %v1406_v56, 5  ;;  %v3811_v3 = vld [vmem:[#allocation18_spill] sm:$0xff] }
  0x54   :  { %2463 = vmatprep.mubr.msk.bf16.mxu1 %vm175_vm1, %v2223_v52  ;;  %v1805_v46 = vsel %vm200_vm0, %v3074_v53, 0  ;;  %v1354_v12 = vrot.slane %v1353_v17, 4  ;;  %v1358_v52 = vrot.slane %v1356_v27, 5  ;;  %v1420_v21 = vshll.u32 %v3228_v7, 16  ;;  %v105_v53 = vld [vmem:[%s3763_s2 + $0x6c] sm:$0x1] }
  0x55   :  { %v3804_v8 = vcombine.low %v2745_v37, %v2766_v48  ;;  %v1317_v50 = vsel %vm2793_vm4, %v1312_v20, %v1316_v18  ;;  %v1331_v5 = vsel %vm2793_vm4, %v1326_v63, %v1330_v22  ;;  %v2246_v7 = vcombine.low %v2949_v23, %v2976_v25  ;;  %v41_v25 = vld [vmem:[%s3761_s0 + $0x44] sm:$0x1] }
  0x56   :  { %v1367_v37 = vor.u32 %v3251_v44, %v3211_v28  ;;  %v1370_v48 = vshll.u32 %v99_v2, 16  ;;  %v1381_v55 = vor.u32 %v3266_v31, %v3253_v33  ;;  %v1384_v11 = vshll.u32 %v101_v54, 16 }
  0x57   :  { %v1431_v56 = vshrl.u32 %v3233_v6, 16  ;;  %v1434_v49 = vshll.u32 %v3233_v6, 16  ;;  %v1345_v19 = vsel %vm2793_vm4, %v1340_v4, %v1344_v34  ;;  %v1395_v62 = vor.u32 %v3282_v14, %v3280_v60  ;;  %v107_v60 = vld [vmem:[%s3763_s2 + $0x74] sm:$0x1] }
  0x58   :  { %v1359_v28 = vsel %vm2793_vm4, %v1354_v12, %v1358_v52  ;;  %v1398_v44 = vshll.u32 %v103_v42, 16  ;;  %v1409_v38 = vor.u32 %v1408_v9, %v1405_v0  ;;  %v1412_v33 = vshll.u32 %v105_v53, 16  ;;  %v3807_v52 = vld [vmem:[#allocation13_spill] sm:$0xff] }
  0x59   :  { %2458 = vmatmul.mubr.msk.bf16.gmra.mxu0 %vm175_vm1, %v2584_v10  ;;  %v1419_v31 = vrot.slane %v1417_v43, 4  ;;  %v1422_v10 = vrot.slane %v1420_v21, 5  ;;  %v1983_v6 = vsel %vm200_vm0, %v3116_v13, 0  ;;  %v2226_v61 = vcombine.low %v1317_v50, %v1331_v5 }
  0x5a   :  { %2481 = vmatprep.mubr.msk.bf16.mxu0 %vm175_vm1, %v3804_v8  ;;  %v1368_v57 = vrot.slane %v1367_v37, 4  ;;  %v1372_v17 = vrot.slane %v1370_v48, 5  ;;  %v1382_v27 = vrot.slane %v1381_v55, 4  ;;  %v1386_v20 = vrot.slane %v1384_v11, 5 }
  0x5b   :  { %2464 = vmatmul.mubr.msk.bf16.vlgmr.msra.gmra.mxu1 %vm175_vm1, %v2224_v16  ;;  %v1433_v18 = vrot.slane %v1431_v56, 4  ;;  %v1436_v63 = vrot.slane %v1434_v49, 5  ;;  %v2227_v22 = vcombine.low %v1345_v19, %v1359_v28  ;;  %v3805_v14 = vcombine.low %v2771_v51, %v2802_v24  ;;  %v40_v51 = vld [vmem:[%s3761_s0 + $0x40] sm:$0xf] }
  0x5c   :  { %2498 = vmatpush3.bf16.msra.mxu1 %v1805_v46  ;;  %2467 = vmatprep.mubr.msk.bf16.mxu1 %vm175_vm1, %v2225_v45  ;;  %v1396_v0 = vrot.slane %v1395_v62, 4  ;;  %v1400_v43 = vrot.slane %v1398_v44, 5  ;;  %v1410_v13 = vrot.slane %v1409_v38, 4  ;;  %v1414_v16 = vrot.slane %v1412_v33, 5  ;;  %v109_v45 = vld [vmem:[%s3763_s2 + $0x7c] sm:$0x1] }
  0x5d   :  { %v3806_v4 = vcombine.low %v2809_v32, %v2841_v47  ;;  %v2277_v24 = vcombine.low %v2969_v15, %v2995_v39  ;;  %v1373_v34 = vsel %vm2793_vm4, %v1368_v57, %v1372_v17  ;;  %v1387_v2 = vsel %vm2793_vm4, %v1382_v27, %v1386_v20  ;;  %v3809_v62 = vld [vmem:[#allocation3_spill] sm:$0xff]  ;;  %v3813_v33 = vld [vmem:[#allocation10_spill] sm:$0xff]  ;;  %v3817_v57 = vld [vmem:[#allocation8_spill] sm:$0xff] }
  0x5e   :  { %v1423_v54 = vor.u32 %v1422_v10, %v1419_v31  ;;  %v2278_v32 = vcombine.low %v3002_v41, %v3026_v35  ;;  %v1426_v47 = vshll.u32 %v107_v60, 16  ;;  %v1437_v9 = vor.u32 %v1436_v63, %v1433_v18  ;;  %v3812_v38 = vld [vmem:[#allocation11_spill] sm:$0xff]  ;;  %v3814_v10 = vld [vmem:[#allocation4_spill] sm:$0xff]  ;;  %v3818_v17 = vld [vmem:[#allocation9_spill] sm:$0xff] }
  0x5f   :  { %v1440_v46 = vshll.u32 %v109_v45, 16  ;;  %v2279_v12 = vcombine.low %v3030_v59, %v3055_v29  ;;  %v2243_v21 = vcombine.low %v3807_v52, %v40_v51  ;;  %v1401_v8 = vsel %vm2793_vm4, %v1396_v0, %v1400_v43  ;;  %v68_v20 = vld [vmem:[%s3760_s1 + $0x20] sm:$0xf]  ;;  %v3820_v18 = vld [vmem:[#allocation16_spill] sm:$0xff]  ;;  %v3821_v63 = vld [vmem:[#allocation15_spill] sm:$0xff] }
  0x60   :  { %v1415_v50 = vsel %vm2793_vm4, %v1410_v13, %v1414_v16  ;;  %v2228_v5 = vcombine.low %v1373_v34, %v1387_v2  ;;  %v1424_v42 = vrot.slane %v1423_v54, 4  ;;  %v1428_v37 = vrot.slane %v1426_v47, 5  ;;  %v2597_v0 = vld [vmem:[%s3760_s1 + $0x1c] sm:$0xf]  ;;  %v3822_v13 = vld [vmem:[#allocation12_spill] sm:$0xff]  ;;  %v3823_v16 = vld [vmem:[#allocation14_spill] sm:$0xff] }
  0x61   :  { %2482 = vmatmul.mubr.msk.bf16.vlgmr.msra.gmra.mxu0 %vm175_vm1, %v3805_v14  ;;  %v2229_v53 = vcombine.low %v1401_v8, %v1415_v50  ;;  %v1438_v48 = vrot.slane %v1437_v9, 4  ;;  %v1442_v55 = vrot.slane %v1440_v46, 5  ;;  %v1921_v19 = vshrl.u32 %v40_v51, 16  ;;  %v3825_v2 = vld [vmem:[#allocation6_spill] sm:$0xff]  ;;  %v3826_v54 = vld [vmem:[#allocation7_spill] sm:$0xff]  ;;  %v3828_v9 = vld [vmem:[#allocation17_spill] sm:$0xff] }
  0x62   :  { %2516 = vmatpush3.bf16.msra.mxu0 %v1983_v6  ;;  %2485 = vmatprep.mubr.msk.bf16.mxu0 %vm175_vm1, %v3806_v4  ;;  %v1429_v11 = vsel %vm2793_vm4, %v1424_v42, %v1428_v37  ;;  %v1924_v30 = vshll.u32 %v40_v51, 16  ;;  %v2247_v40 = vcombine.low %v3811_v3, %v58_v58  ;;  %v2273_v23 = vcombine.low %v3813_v33, %v3812_v38  ;;  %v3815_v6 = vld [vmem:[#allocation5_spill] sm:$0xff]  ;;  %v2598_v8 = vld [vmem:[%s3760_s1 + $0x30] sm:$0xf]  ;;  %v2599_v50 = vld [vmem:[%s3760_s1 + $0x34] sm:$0xf] }
  0x63   :  { %2468 = vmatmul.mubr.msk.bf16.gmra.mxu1 %vm175_vm1, %v2226_v61  ;;  %v1443_v56 = vsel %vm2793_vm4, %v1438_v48, %v1442_v55  ;;  %v1930_v31 = vshll.u32 %v41_v25, 16  ;;  %v3816_v61 = vcombine.low %v3814_v10, %v3815_v6  ;;  %v3819_v27 = vcombine.low %v3817_v57, %v3818_v17  ;;  %v59_v42 = vld [vmem:[%s3761_s0 + $0x8c] sm:$0x1]  ;;  %v2601_v37 = vld [vmem:[%s3760_s1 + $0x3c] sm:$0xf] }
  0x64   :  { %2471 = vmatprep.mubr.msk.bf16.mxu1 %vm175_vm1, %v2227_v22  ;;  %v2230_v49 = vcombine.low %v1429_v11, %v1443_v56  ;;  %v1926_v44 = vrot.slane %v1924_v30, 5  ;;  %v2275_v22 = vcombine.low %v3821_v63, %v3820_v18  ;;  %v2259_v43 = vcombine.low %v2597_v0, %v68_v20  ;;  %v77_v56 = vld [vmem:[%s3760_s1 + $0x44] sm:$0xf]  ;;  %v2602_v30 = vld [vmem:[%s3760_s1 + $0x40] sm:$0xf]  ;;  %v3829_v39 = vld [vmem:[#allocation19_spill] sm:$0xff] }
  0x65   :  { %v1932_v14 = vrot.slane %v1930_v31, 5  ;;  %v3824_v45 = vcombine.low %v3822_v13, %v3823_v16  ;;  %v1935_v4 = vshrl.u32 %v58_v58, 16  ;;  %v1938_v51 = vshll.u32 %v58_v58, 16 }
  0x66   :  { %v3827_v47 = vcombine.low %v3825_v2, %v3826_v54  ;;  %v1944_v11 = vshll.u32 %v59_v42, 16  ;;  %v2263_v58 = vcombine.low %v2602_v30, %v77_v56 }
  0x67   :  { %v1937_v52 = vrot.slane %v1935_v4, 4 }
  0x69   :  { %2486 = vmatmul.mubr.msk.bf16.gmra.mxu0 %vm175_vm1, %v2243_v21  ;;  %v1940_v21 = vrot.slane %v1938_v51, 5 }
  0x6a   :  { %2489 = vmatprep.mubr.msk.bf16.mxu0 %vm175_vm1, %v2244_v36  ;;  %v3808_v36 = vld [vmem:[#allocation2_spill] sm:$0xff] }
  0x6b   :  { %2472 = vmatmul.mubr.msk.bf16.gmra.mxu1 %vm175_vm1, %v2228_v5  ;;  %v3810_v28 = vcombine.low %v3808_v36, %v3809_v62  ;;  %v2261_v5 = vcombine.low %v2598_v8, %v2599_v50  ;;  %v1941_v55 = vor.u32 %v1940_v21, %v1937_v52 }
  0x6c   :  { %2475 = vmatprep.mubr.msk.bf16.mxu1 %vm175_vm1, %v2229_v53  ;;  %v2600_v53 = vld [vmem:[%s3760_s1 + $0x38] sm:$0xf] }
  0x6d   :  { %v2262_v48 = vcombine.low %v2600_v53, %v2601_v37 }
  0x71   :  { %2490 = vmatmul.mubr.msk.bf16.gmra.mxu0 %vm175_vm1, %v2245_v26  ;;  %v1923_v26 = vrot.slane %v1921_v19, 4  ;;  %v1946_v19 = vrot.slane %v1944_v11, 5 }
  0x72   :  { %2493 = vmatprep.mubr.msk.bf16.mxu0 %vm175_vm1, %v2246_v7 }
  0x73   :  { %2476 = vmatmul.mubr.msk.bf16.gmra.mxu1 %vm175_vm1, %v2230_v49  ;;  %v1927_v7 = vor.u32 %v1926_v44, %v1923_v26  ;;  %v1942_v49 = vrot.slane %v1941_v55, 4 }
  0x74   :  { %2499 = vmatprep.mubr.msk.bf16.mxu1 %vm175_vm1, %v3810_v28 }
  0x75   :  { %v1928_v60 = vrot.slane %v1927_v7, 4  ;;  %v1947_v15 = vsel %vm2793_vm4, %v1942_v49, %v1946_v19 }
  0x77   :  { %v1933_v34 = vsel %vm2793_vm4, %v1928_v60, %v1932_v14 }
  0x78   :  { %v2276_v46 = vcombine.low %v3828_v9, %v1933_v34 }
  0x79   :  { %2494 = vmatmul.mubr.msk.bf16.gmra.mxu0 %vm175_vm1, %v2247_v40 }
  0x7a   :  { %2517 = vmatprep.mubr.msk.bf16.mxu0 %vm175_vm1, %v2273_v23 }
  0x7b   :  { %2500 = vmatmul.mubr.msk.bf16.vlgmr.msra.gmra.mxu1 %vm175_vm1, %v3816_v61 }
  0x7c   :  { %2503 = vmatprep.mubr.msk.bf16.mxu1 %vm175_vm1, %v3819_v27 }
  0x81   :  { %2518 = vmatmul.mubr.msk.bf16.vlgmr.msra.gmra.mxu0 %vm175_vm1, %v3824_v45 }
  0x82   :  { %2521 = vmatprep.mubr.msk.bf16.mxu0 %vm175_vm1, %v2275_v22 }
  0x83   :  { %2504 = vmatmul.mubr.msk.bf16.gmra.mxu1 %vm175_vm1, %v2259_v43 }
  0x84   :  { %2507 = vmatprep.mubr.msk.bf16.mxu1 %vm175_vm1, %v3827_v47 }
  0x89   :  { %2522 = vmatmul.mubr.msk.bf16.gmra.mxu0 %vm175_vm1, %v2276_v46 }
  0x8a   :  { %2525 = vmatprep.mubr.msk.bf16.mxu0 %vm175_vm1, %v2277_v24  ;;  %v2280_v24 = vcombine.low %v3829_v39, %v1947_v15 }
  0x8b   :  { %2508 = vmatmul.mubr.msk.bf16.gmra.mxu1 %vm175_vm1, %v2261_v5 }
  0x8c   :  { %2511 = vmatprep.mubr.msk.bf16.mxu1 %vm175_vm1, %v2262_v48 }
  0x91   :  { %2526 = vmatmul.mubr.msk.bf16.gmra.mxu0 %vm175_vm1, %v2278_v32 }
  0x92   :  { %2529 = vmatprep.mubr.msk.bf16.mxu0 %vm175_vm1, %v2279_v12 }
  0x93   :  { %2512 = vmatmul.mubr.msk.bf16.gmra.mxu1 %vm175_vm1, %v2263_v58 }
  0x99   :  { %2530 = vmatmul.mubr.msk.bf16.gmra.mxu0 %vm175_vm1, %v2280_v24 }
  0xca   :  { %v2375_v36 = vpop.f32.mrf.mxu0  ;;  %v2383_v62 = vpop.f32.mrf.mxu1 }
  0xcc   :  { %v238_v28 = vpop.f32.mrf.mxu0  ;;  %v270_v41 = vpop.f32.mrf.mxu1 }
  0xce   :  { %v2376_v35 = vpop.f32.mrf.mxu0  ;;  %v2384_v32 = vpop.f32.mrf.mxu1 }
  0xd0   :  { %v241_v3 = vpop.f32.mrf.mxu0  ;;  %v273_v40 = vpop.f32.mrf.mxu1 }
  0xd2   :  { %v2379_v59 = vpop.f32.mrf.mxu0  ;;  %v2387_v29 = vpop.f32.mrf.mxu1 }
  0xd4   :  { %v254_v12 = vpop.f32.mrf.mxu0  ;;  %v286_v26 = vpop.f32.mrf.mxu1 }
  0xd6   :  { %v2380_v1 = vpop.f32.mrf.mxu0  ;;  %v2388_v44 = vpop.f32.mrf.mxu1 }
  0xd8   :  { %v257_v38 = vpop.f32.mrf.mxu0  ;;  %v289_v33 = vpop.f32.mrf.mxu1 }
  0xda   :  { %v2393_v23 = vpop.f32.mrf.mxu1  ;;  %v2411_v25 = vpop.f32.mrf.mxu0 }
  0xdb   :  { %v411_v7 = vadd.f32 %v2393_v23, %v2375_v36 }
  0xdc   :  { %v402_v31 = vpop.f32.mrf.mxu1  ;;  %v777_v10 = vpop.f32.mrf.mxu0 }
  0xdd   :  { %v3488_v6 = vadd.f32 %v2411_v25, %v411_v7  ;;  %v403_v61 = vadd.f32 %v402_v31, %v238_v28 }
  0xde   :  { %v2394_v57 = vpop.f32.mrf.mxu1  ;;  %v2412_v17 = vpop.f32.mrf.mxu0 }
  0xdf   :  { %v3490_v27 = vadd.f32 %v777_v10, %v403_v61  ;;  %v414_v20 = vadd.f32 %v2394_v57, %v2376_v35 }
  0xe0   :  { %v405_v18 = vpop.f32.mrf.mxu1  ;;  %v780_v63 = vpop.f32.mrf.mxu0 }
  0xe1   :  { %v3492_v22 = vadd.f32 %v2412_v17, %v414_v20  ;;  %v406_v60 = vadd.f32 %v405_v18, %v241_v3 }
  0xe2   :  { %v2397_v14 = vpop.f32.mrf.mxu1 }
  0xe3   :  { %v3494_v0 = vadd.f32 %v780_v63, %v406_v60  ;;  %v427_v43 = vadd.f32 %v2397_v14, %v2379_v59 }
  0xe4   :  { %v418_v16 = vpop.f32.mrf.mxu1 }
  0xe5   :  { %v2415_v13 = vpop.f32.mrf.mxu0  ;;  %v419_v4 = vadd.f32 %v418_v16, %v254_v12 }
  0xe6   :  { %v3496_v45 = vadd.f32 %v2415_v13, %v427_v43  ;;  %v2398_v34 = vpop.f32.mrf.mxu1 }
  0xe7   :  { %v793_v51 = vpop.f32.mrf.mxu0  ;;  %v430_v54 = vadd.f32 %v2398_v34, %v2380_v1 }
  0xe8   :  { %v3498_v2 = vadd.f32 %v793_v51, %v419_v4  ;;  %v421_v9 = vpop.f32.mrf.mxu1 }
  0xe9   :  { %v2416_v47 = vpop.f32.mrf.mxu0  ;;  %v422_v52 = vadd.f32 %v421_v9, %v257_v38 }
  0xea   :  { %v3500_v46 = vadd.f32 %v2416_v47, %v430_v54  ;;  %v2401_v8 = vpop.f32.mrf.mxu1 }
  0xeb   :  { %v796_v21 = vpop.f32.mrf.mxu0  ;;  %v443_v5 = vadd.f32 %v2401_v8, %v2383_v62 }
  0xec   :  { %v3502_v50 = vadd.f32 %v796_v21, %v422_v52  ;;  %v434_v42 = vpop.f32.mrf.mxu1 }
  0xed   :  { %v435_v53 = vadd.f32 %v434_v42, %v270_v41 }
  0xee   :  { %v2402_v48 = vpop.f32.mrf.mxu1 }
  0xef   :  { %v2419_v37 = vpop.f32.mrf.mxu0  ;;  %v446_v11 = vadd.f32 %v2402_v48, %v2384_v32 }
  0xf0   :  { %v3504_v55 = vadd.f32 %v2419_v37, %v443_v5  ;;  %v437_v49 = vpop.f32.mrf.mxu1 }
  0xf1   :  { %v809_v56 = vpop.f32.mrf.mxu0  ;;  %v438_v30 = vadd.f32 %v437_v49, %v273_v40 }
  0xf2   :  { %v3506_v19 = vadd.f32 %v809_v56, %v435_v53  ;;  %v2405_v15 = vpop.f32.mrf.mxu1 }
  0xf3   :  { %v2420_v58 = vpop.f32.mrf.mxu0  ;;  %v459_v24 = vadd.f32 %v2405_v15, %v2387_v29 }
  0xf4   :  { %v3508_v39 = vadd.f32 %v2420_v58, %v446_v11  ;;  %v450_v28 = vpop.f32.mrf.mxu1 }
  0xf5   :  { %v812_v36 = vpop.f32.mrf.mxu0  ;;  %v451_v41 = vadd.f32 %v450_v28, %v286_v26 }
  0xf6   :  { %v3510_v62 = vadd.f32 %v812_v36, %v438_v30  ;;  %v2406_v35 = vpop.f32.mrf.mxu1 }
  0xf7   :  { %v462_v3 = vadd.f32 %v2406_v35, %v2388_v44 }
  0xf8   :  { %v453_v12 = vpop.f32.mrf.mxu1 }
  0xf9   :  { %v2423_v59 = vpop.f32.mrf.mxu0  ;;  %v454_v1 = vadd.f32 %v453_v12, %v289_v33 }
  0xfa   :  { %v3512_v32 = vadd.f32 %v2423_v59, %v459_v24  ;;  %v2429_v23 = vpop.f32.mrf.mxu1 }
  0xfb   :  { %v825_v38 = vpop.f32.mrf.mxu0 }
  0xfc   :  { %v3514_v40 = vadd.f32 %v825_v38, %v451_v41  ;;  %v961_v7 = vpop.f32.mrf.mxu1 }
  0xfd   :  { %v2424_v25 = vpop.f32.mrf.mxu0 }
  0xfe   :  { %3830 = vst [vmem:[#allocation13_spill] sm:$0xff] %v3514_v40  ;;  %v3516_v31 = vadd.f32 %v2424_v25, %v462_v3  ;;  %v2430_v10 = vpop.f32.mrf.mxu1 }
  0xff   :  { %v828_v29 = vpop.f32.mrf.mxu0 }
 0x100   :  { %3831 = vst [vmem:[#allocation2_spill] sm:$0xff] %v3516_v31  ;;  %v3518_v61 = vadd.f32 %v828_v29, %v454_v1  ;;  %v964_v57 = vpop.f32.mrf.mxu1 }
 0x101   :  { %v2447_v26 = vpop.f32.mrf.mxu0 }
 0x102   :  { %3832 = vst [vmem:[#allocation3_spill] sm:$0xff] %v3518_v61 }
 0x103   :  { %v1141_v44 = vpop.f32.mrf.mxu0  ;;  %v3520_v17 = vpop.f32.mrf.mxu1 }
 0x105   :  { %v2448_v20 = vpop.f32.mrf.mxu0  ;;  %v3522_v18 = vpop.f32.mrf.mxu1 }
 0x107   :  { %v3524_v33 = vpop.f32.mrf.mxu0  ;;  %v3526_v63 = vpop.f32.mrf.mxu1 }
 0x109   :  { %v3528_v60 = vpop.f32.mrf.mxu0  ;;  %v3530_v14 = vpop.f32.mrf.mxu1 }
 0x10b   :  { %v3532_v43 = vpop.f32.mrf.mxu0  ;;  %v3534_v13 = vpop.f32.mrf.mxu1 }
 0x10d   :  { %v3536_v16 = vpop.f32.mrf.mxu0  ;;  %v3538_v4 = vpop.f32.mrf.mxu1 }
 0x10f   :  { %v3540_v51 = vpop.f32.mrf.mxu0  ;;  %v3542_v34 = vpop.f32.mrf.mxu1 }
 0x111   :  { %v3544_v54 = vpop.f32.mrf.mxu0  ;;  %v3546_v47 = vpop.f32.mrf.mxu1 }
 0x113   :  { %v3548_v9 = vpop.f32.mrf.mxu0  ;;  %v3550_v52 = vpop.f32.mrf.mxu1 }
 0x115   :  { %v3552_v21 = vpop.f32.mrf.mxu0  ;;  %v3554_v8 = vpop.f32.mrf.mxu1 }
 0x116   :  { %3833 = vst [vmem:[#allocation18_spill] sm:$0xff] %v3554_v8  ;;  %v1024_v8 = vadd.f32 %v961_v7, %v3490_v27  ;;  %v1030_v7 = vadd.f32 %v3520_v17, %v3496_v45 }
 0x117   :  { %v3556_v5 = vpop.f32.mrf.mxu0  ;;  %v3558_v42 = vpop.f32.mrf.mxu1 }
 0x118   :  { %3834 = vst [vmem:[#allocation11_spill] sm:$0xff] %v3556_v5  ;;  %3835 = vst [vmem:[#allocation10_spill] sm:$0xff] %v3558_v42  ;;  %v1026_v42 = vadd.f32 %v2429_v23, %v3488_v6  ;;  %v1025_v6 = vadd.f32 %v964_v57, %v3494_v0  ;;  %v1031_v57 = vadd.f32 %v3526_v63, %v3500_v46 }
 0x119   :  { %v3560_v53 = vpop.f32.mrf.mxu0  ;;  %v3562_v37 = vpop.f32.mrf.mxu1  ;;  %v1034_v63 = vadd.f32 %v3534_v13, %v3504_v55 }
 0x11a   :  { %3836 = vst [vmem:[#allocation4_spill] sm:$0xff] %v3560_v53  ;;  %3837 = vst [vmem:[#allocation5_spill] sm:$0xff] %v3562_v37  ;;  %v1211_v46 = vadd.f32 %v3536_v16, %v1031_v57 }
 0x11b   :  { %v3564_v48 = vpop.f32.mrf.mxu0  ;;  %v2465_v11 = vpop.f32.mrf.mxu1 }
 0x11c   :  { %3838 = vst [vmem:[#allocation8_spill] sm:$0xff] %v3564_v48 }
 0x11d   :  { %v3566_v56 = vpop.f32.mrf.mxu0  ;;  %v1533_v49 = vpop.f32.mrf.mxu1 }
 0x11e   :  { %3839 = vst [vmem:[#allocation9_spill] sm:$0xff] %v3566_v56 }
 0x11f   :  { %v3568_v30 = vpop.f32.mrf.mxu0  ;;  %v2466_v58 = vpop.f32.mrf.mxu1 }
 0x120   :  { %3840 = vst [vmem:[#allocation16_spill] sm:$0xff] %v3568_v30 }
 0x121   :  { %v2483_v15 = vpop.f32.mrf.mxu0  ;;  %v1536_v24 = vpop.f32.mrf.mxu1 }
 0x123   :  { %v1685_v36 = vpop.f32.mrf.mxu0  ;;  %v2469_v28 = vpop.f32.mrf.mxu1 }
 0x125   :  { %v2484_v41 = vpop.f32.mrf.mxu0  ;;  %v1549_v35 = vpop.f32.mrf.mxu1 }
 0x127   :  { %v1688_v3 = vpop.f32.mrf.mxu0  ;;  %v2470_v59 = vpop.f32.mrf.mxu1 }
 0x128   :  { %v1603_v16 = vadd.f32 %v2470_v59, %v1211_v46 }
 0x129   :  { %v3570_v12 = vpop.f32.mrf.mxu0  ;;  %v3572_v1 = vpop.f32.mrf.mxu1 }
 0x12b   :  { %v3574_v38 = vpop.f32.mrf.mxu0  ;;  %v3576_v25 = vpop.f32.mrf.mxu1 }
 0x12d   :  { %v3578_v29 = vpop.f32.mrf.mxu0  ;;  %v3580_v30 = vpop.f32.mrf.mxu1 }
 0x12e   :  { %3841 = vst [vmem:[#allocation15_spill] sm:$0xff] %v3580_v30  ;;  %v1206_v30 = vadd.f32 %v2447_v26, %v1026_v42 }
 0x12f   :  { %v3582_v56 = vpop.f32.mrf.mxu0  ;;  %v3584_v37 = vpop.f32.mrf.mxu1 }
 0x130   :  { %3842 = vst [vmem:[#allocation12_spill] sm:$0xff] %v3582_v56  ;;  %3843 = vst [vmem:[#allocation14_spill] sm:$0xff] %v3584_v37  ;;  %v1027_v56 = vadd.f32 %v2430_v10, %v3492_v22  ;;  %v1598_v23 = vadd.f32 %v2465_v11, %v1206_v30  ;;  %v1205_v10 = vadd.f32 %v3524_v33, %v1025_v6 }
 0x131   :  { %v3586_v61 = vpop.f32.mrf.mxu0  ;;  %v3588_v48 = vpop.f32.mrf.mxu1  ;;  %v1210_v11 = vadd.f32 %v3528_v60, %v1030_v7  ;;  %v1214_v7 = vadd.f32 %v3544_v54, %v1034_v63 }
 0x132   :  { %3844 = vst [vmem:[#allocation6_spill] sm:$0xff] %v3586_v61  ;;  %3845 = vst [vmem:[#allocation7_spill] sm:$0xff] %v3588_v48  ;;  %v1204_v48 = vadd.f32 %v1141_v44, %v1024_v8  ;;  %v1207_v27 = vadd.f32 %v2448_v20, %v1027_v56  ;;  %v1028_v44 = vadd.f32 %v3522_v18, %v3498_v2 }
 0x133   :  { %v3591_v31 = vpop.f32.mrf.mxu0  ;;  %v3593_v53 = vpop.f32.mrf.mxu1  ;;  %v1750_v8 = vadd.f32 %v2483_v15, %v1598_v23  ;;  %v1597_v17 = vadd.f32 %v1536_v24, %v1205_v10  ;;  %v1029_v56 = vadd.f32 %v3530_v14, %v3502_v50  ;;  %v1602_v30 = vadd.f32 %v2469_v28, %v1210_v11 }
 0x134   :  { %3846 = vst [vmem:[#allocation17_spill] sm:$0xff] %v3591_v31  ;;  %3847 = vst [vmem:[#allocation19_spill] sm:$0xff] %v3593_v53  ;;  %v1599_v0 = vadd.f32 %v2466_v58, %v1207_v27  ;;  %v1208_v2 = vadd.f32 %v3532_v43, %v1028_v44  ;;  %v1032_v28 = vadd.f32 %v3538_v4, %v3506_v19 }
 0x135   :  { %v3596_v40 = vpop.f32.mrf.mxu0  ;;  %v3598_v5 = vpop.f32.mrf.mxu1  ;;  %v1749_v14 = vadd.f32 %v1688_v3, %v1597_v17  ;;  %v1209_v43 = vadd.f32 %v3540_v51, %v1029_v56  ;;  %v1754_v55 = vadd.f32 %v3570_v12, %v1602_v30  ;;  %v3851_v56 = vld [vmem:[#allocation11_spill] sm:$0xff] }
 0x136   :  { %3848 = vst [vmem:[#allocation20_spill] sm:$0xff] %v3598_v5  ;;  %v1596_v5 = vadd.f32 %v1533_v49, %v1204_v48  ;;  %v1751_v18 = vadd.f32 %v2484_v41, %v1599_v0  ;;  %v1600_v15 = vadd.f32 %v1549_v35, %v1208_v2  ;;  %v1035_v35 = vadd.f32 %v3542_v34, %v3508_v39  ;;  %v3853_v2 = vld [vmem:[#allocation18_spill] sm:$0xff] }
 0x137   :  { %v3601_v37 = vpop.f32.mrf.mxu0  ;;  %v3603_v61 = vpop.f32.mrf.mxu1  ;;  %v1601_v3 = vadd.f32 %v3572_v1, %v1209_v43  ;;  %v1212_v54 = vadd.f32 %v3548_v9, %v1032_v28  ;;  %v1033_v39 = vadd.f32 %v3546_v47, %v3510_v62  ;;  %v1606_v34 = vadd.f32 %v3576_v25, %v1214_v7  ;;  %v3849_v47 = vld [vmem:[#allocation15_spill] sm:$0xff]  ;;  %v3850_v11 = vld [vmem:[#allocation12_spill] sm:$0xff]  ;;  %v3858_v43 = vld [vmem:[#allocation10_spill] sm:$0xff] }
 0x138   :  { %v1748_v45 = vadd.f32 %v1685_v36, %v1596_v5  ;;  %v3633_v5 = vld [vmem:[%s3764_s5] ss:$0 sm:$0xff]  ;;  %v1752_v19 = vadd.f32 %v3574_v38, %v1600_v15  ;;  %v1755_v38 = vadd.f32 %v3578_v29, %v1603_v16  ;;  %v1215_v9 = vadd.f32 %v3552_v21, %v1035_v35  ;;  %v3856_v15 = vld [vmem:[#allocation4_spill] sm:$0xff] }
 0x139   :  { %v3606_v31 = vpop.f32.mrf.mxu0  ;;  %v3608_v53 = vpop.f32.mrf.mxu1  ;;  %v1038_v62 = vadd.f32 %v3550_v52, %v3512_v32  ;;  %v1604_v25 = vadd.f32 %v3849_v47, %v1212_v54  ;;  %v1753_v29 = vadd.f32 %v3850_v11, %v1601_v3  ;;  %v1213_v21 = vadd.f32 %v3851_v56, %v1033_v39  ;;  %v3854_v52 = vld [vmem:[#allocation14_spill] sm:$0xff]  ;;  %v3859_v16 = vld [vmem:[#allocation7_spill] sm:$0xff]  ;;  %v3861_v3 = vld [vmem:[#allocation8_spill] sm:$0xff] }
 0x13a   :  { %v3855_v46 = vld [vmem:[#allocation6_spill] sm:$0xff]  ;;  %v3867_v11 = vld [vmem:[#allocation16_spill] sm:$0xff] }
 0x13b   :  { %v3612_v26 = vpop.f32.mrf.mxu0  ;;  %v2501_v22 = vpop.f32.mrf.mxu1  ;;  %v1758_v63 = vadd.f32 %v3855_v46, %v1606_v34 }
 0x13c   :  { %v1906_v48 = vadd.f32 %v2501_v22, %v1750_v8 }
 0x13d   :  { %v3619_v42 = vpop.f32.mrf.mxu0  ;;  %v1841_v20 = vpop.f32.mrf.mxu1 }
 0x13e   :  { %v1904_v58 = vadd.f32 %v1841_v20, %v1748_v45 }
 0x13f   :  { %v3624_v33 = vpop.f32.mrf.mxu0  ;;  %v2502_v49 = vpop.f32.mrf.mxu1 }
 0x140   :  { %v1907_v36 = vadd.f32 %v2502_v49, %v1751_v18  ;;  %v3852_v49 = vld [vmem:[#allocation13_spill] sm:$0xff]  ;;  %v1607_v18 = vadd.f32 %v3854_v52, %v1215_v9 }
 0x141   :  { %v2519_v60 = vpop.f32.mrf.mxu0  ;;  %v1844_v50 = vpop.f32.mrf.mxu1  ;;  %v1036_v32 = vadd.f32 %v3853_v2, %v3852_v49 }
 0x142   :  { %v2084_v24 = vadd.f32 %v2519_v60, %v1906_v48  ;;  %v1905_v27 = vadd.f32 %v1844_v50, %v1749_v14  ;;  %v1759_v34 = vadd.f32 %v3596_v40, %v1607_v18 }
 0x143   :  { %v2019_v41 = vpop.f32.mrf.mxu0  ;;  %v2505_v6 = vpop.f32.mrf.mxu1 }
 0x144   :  { %v2107_v13 = vadd.f32 %v3633_v5, %v2084_v24  ;;  %v2082_v23 = vadd.f32 %v2019_v41, %v1904_v58  ;;  %v1910_v12 = vadd.f32 %v2505_v6, %v1754_v55  ;;  %v1218_v24 = vadd.f32 %v3856_v15, %v1038_v62 }
 0x145   :  { %v2520_v51 = vpop.f32.mrf.mxu0  ;;  %v1857_v22 = vpop.f32.mrf.mxu1  ;;  %v1605_v41 = vadd.f32 %v3859_v16, %v1213_v21 }
 0x146   :  { %2123 = vst.msk [vmem:[%s3765_s6 + $0x10] sm:$0xff] %vm175_vm1, %v2107_v13  ;;  %v2105_v4 = vadd.f32 %v3633_v5, %v2082_v23  ;;  %v2085_v59 = vadd.f32 %v2520_v51, %v1907_v36  ;;  %v1908_v0 = vadd.f32 %v1857_v22, %v1752_v19  ;;  %v3857_v36 = vld [vmem:[#allocation2_spill] sm:$0xff]  ;;  %v3860_v13 = vld [vmem:[#allocation17_spill] sm:$0xff]  ;;  %v1216_v51 = vadd.f32 %v3861_v3, %v1036_v32  ;;  %v3862_v22 = vld [vmem:[#allocation3_spill] sm:$0xff] }
 0x147   :  { %v2022_v1 = vpop.f32.mrf.mxu0  ;;  %v2506_v10 = vpop.f32.mrf.mxu1  ;;  %v1039_v28 = vadd.f32 %v3858_v43, %v3857_v36  ;;  %v1756_v23 = vadd.f32 %v3860_v13, %v1604_v25  ;;  %v3863_v19 = vld [vmem:[#allocation5_spill] sm:$0xff]  ;;  %v1757_v25 = vadd.f32 %v3601_v37, %v1605_v41 }
 0x148   :  { %2121 = vst.msk [vmem:[%s3765_s6] sm:$0xff] %vm175_vm1, %v2105_v4  ;;  %v2108_v44 = vadd.f32 %v3633_v5, %v2085_v59  ;;  %v2083_v8 = vadd.f32 %v2022_v1, %v1905_v27  ;;  %v1911_v48 = vadd.f32 %v2506_v10, %v1755_v38  ;;  %v1037_v4 = vadd.f32 %v3863_v19, %v3862_v22  ;;  %v3864_v59 = vld [vmem:[#allocation19_spill] sm:$0xff] }
 0x149   :  { %v2523_v57 = vpop.f32.mrf.mxu0  ;;  %v1860_v20 = vpop.f32.mrf.mxu1 }
 0x14a   :  { %2124 = vst.msk [vmem:[%s3765_s6 + $0x18] sm:$0xff] %vm175_vm1, %v2108_v44  ;;  %v2106_v45 = vadd.f32 %v3633_v5, %v2083_v8  ;;  %v2088_v17 = vadd.f32 %v2523_v57, %v1910_v12  ;;  %v1909_v14 = vadd.f32 %v1860_v20, %v1753_v29  ;;  %v1610_v12 = vadd.f32 %v3864_v59, %v1218_v24  ;;  %v3865_v44 = vld [vmem:[#allocation9_spill] sm:$0xff] }
 0x14b   :  { %v2035_v30 = vpop.f32.mrf.mxu0  ;;  %v2509_v58 = vpop.f32.mrf.mxu1  ;;  %v1219_v8 = vadd.f32 %v3865_v44, %v1039_v28  ;;  %v1217_v29 = vadd.f32 %v3867_v11, %v1037_v4 }
 0x14c   :  { %2122 = vst.msk [vmem:[%s3765_s6 + $0x8] sm:$0xff] %vm175_vm1, %v2106_v45  ;;  %v2111_v60 = vadd.f32 %v3633_v5, %v2088_v17  ;;  %v2086_v50 = vadd.f32 %v2035_v30, %v1908_v0  ;;  %v1914_v35 = vadd.f32 %v2509_v58, %v1758_v63  ;;  %v3866_v0 = vld [vmem:[#allocation20_spill] sm:$0xff]  ;;  %v1762_v56 = vadd.f32 %v3606_v31, %v1610_v12 }
 0x14d   :  { %v2524_v6 = vpop.f32.mrf.mxu0  ;;  %v1873_v55 = vpop.f32.mrf.mxu1  ;;  %v1608_v9 = vadd.f32 %v3866_v0, %v1216_v51  ;;  %v1611_v45 = vadd.f32 %v3603_v61, %v1219_v8  ;;  %v1609_v2 = vadd.f32 %v3608_v53, %v1217_v29 }
 0x14e   :  { %2127 = vst.msk [vmem:[%s3765_s6 + $0x30] sm:$0xff] %vm175_vm1, %v2111_v60  ;;  %v2109_v27 = vadd.f32 %v3633_v5, %v2086_v50  ;;  %v2089_v7 = vadd.f32 %v2524_v6, %v1911_v48  ;;  %v1912_v38 = vadd.f32 %v1873_v55, %v1756_v23 }
 0x14f   :  { %v2038_v54 = vpop.f32.mrf.mxu0  ;;  %v2510_v39 = vpop.f32.mrf.mxu1  ;;  %v1760_v18 = vadd.f32 %v3612_v26, %v1608_v9  ;;  %v1763_v63 = vadd.f32 %v3619_v42, %v1611_v45  ;;  %v1761_v15 = vadd.f32 %v3624_v33, %v1609_v2 }
 0x150   :  { %2125 = vst.msk [vmem:[%s3765_s6 + $0x20] sm:$0xff] %vm175_vm1, %v2109_v27  ;;  %v2112_v1 = vadd.f32 %v3633_v5, %v2089_v7  ;;  %v2087_v10 = vadd.f32 %v2038_v54, %v1909_v14  ;;  %v1915_v20 = vadd.f32 %v2510_v39, %v1759_v34 }
 0x151   :  { %v2527_v62 = vpop.f32.mrf.mxu0  ;;  %v1876_v47 = vpop.f32.mrf.mxu1 }
 0x152   :  { %2128 = vst.msk [vmem:[%s3765_s6 + $0x38] sm:$0xff] %vm175_vm1, %v2112_v1  ;;  %v2110_v40 = vadd.f32 %v3633_v5, %v2087_v10  ;;  %v2092_v57 = vadd.f32 %v2527_v62, %v1914_v35  ;;  %v1913_v49 = vadd.f32 %v1876_v47, %v1757_v25 }
 0x153   :  { %v2051_v17 = vpop.f32.mrf.mxu0  ;;  %v2513_v48 = vpop.f32.mrf.mxu1 }
 0x154   :  { %2126 = vst.msk [vmem:[%s3765_s6 + $0x28] sm:$0xff] %vm175_vm1, %v2110_v40  ;;  %v2115_v37 = vadd.f32 %v3633_v5, %v2092_v57  ;;  %v2090_v21 = vadd.f32 %v2051_v17, %v1912_v38  ;;  %v1918_v30 = vadd.f32 %v2513_v48, %v1762_v56 }
 0x155   :  { %v2528_v32 = vpop.f32.mrf.mxu0  ;;  %v1889_v52 = vpop.f32.mrf.mxu1 }
 0x156   :  { %2131 = vst.msk [vmem:[%s3765_s6 + $0x50] sm:$0xff] %vm175_vm1, %v2115_v37  ;;  %v2113_v31 = vadd.f32 %v3633_v5, %v2090_v21  ;;  %v2093_v61 = vadd.f32 %v2528_v32, %v1915_v20  ;;  %v1916_v60 = vadd.f32 %v1889_v52, %v1760_v18 }
 0x157   :  { %v2054_v58 = vpop.f32.mrf.mxu0  ;;  %v2514_v46 = vpop.f32.mrf.mxu1 }
 0x158   :  { %2129 = vst.msk [vmem:[%s3765_s6 + $0x40] sm:$0xff] %vm175_vm1, %v2113_v31  ;;  %v2116_v53 = vadd.f32 %v3633_v5, %v2093_v61  ;;  %v2091_v26 = vadd.f32 %v2054_v58, %v1913_v49  ;;  %v1919_v36 = vadd.f32 %v2514_v46, %v1763_v63 }
 0x159   :  { %v2531_v50 = vpop.f32.mrf.mxu0  ;;  %v1892_v14 = vpop.f32.mrf.mxu1 }
 0x15a   :  { %2132 = vst.msk [vmem:[%s3765_s6 + $0x58] sm:$0xff] %vm175_vm1, %v2116_v53  ;;  %v2114_v42 = vadd.f32 %v3633_v5, %v2091_v26  ;;  %v2096_v24 = vadd.f32 %v2531_v50, %v1918_v30  ;;  %v1917_v41 = vadd.f32 %v1892_v14, %v1761_v15 }
 0x15b   :  { %v2067_v43 = vpop.f32.mrf.mxu0 }
 0x15c   :  { %2130 = vst.msk [vmem:[%s3765_s6 + $0x48] sm:$0xff] %vm175_vm1, %v2114_v42  ;;  %v2119_v28 = vadd.f32 %v3633_v5, %v2096_v24  ;;  %v2094_v16 = vadd.f32 %v2067_v43, %v1916_v60 }
 0x15d   :  { %v2532_v33 = vpop.f32.mrf.mxu0 }
 0x15e   :  { %2135 = vst.msk [vmem:[%s3765_s6 + $0x70] sm:$0xff] %vm175_vm1, %v2119_v28  ;;  %v2117_v6 = vadd.f32 %v3633_v5, %v2094_v16  ;;  %v2097_v55 = vadd.f32 %v2532_v33, %v1919_v36 }
 0x15f   :  { %v2070_v13 = vpop.f32.mrf.mxu0 }
 0x160   :  { %2133 = vst.msk [vmem:[%s3765_s6 + $0x60] sm:$0xff] %vm175_vm1, %v2117_v6  ;;  %v2120_v23 = vadd.f32 %v3633_v5, %v2097_v55  ;;  %v2095_v27 = vadd.f32 %v2070_v13, %v1917_v41 }
 0x162   :  { %2136 = vst.msk [vmem:[%s3765_s6 + $0x78] sm:$0xff] %vm175_vm1, %v2120_v23  ;;  %v2118_v7 = vadd.f32 %v3633_v5, %v2095_v27 }
 0x164   :  { %2134 = vst.msk [vmem:[%s3765_s6 + $0x68] sm:$0xff] %vm175_vm1, %v2118_v7 }

</bundles_post_ra>
